<compile_context>
chip_gen: v7x
topology: tpu7x:2x2x1
jax: 0.10.0
libtpu: 0.0.40
codegen_flags: <defaults>
</compile_context>

<pallas_src>
import functools

import numpy as np
import jax
import jax.numpy as jnp
from jax.experimental import pallas as pl
from jax.experimental.pallas import tpu as pltpu


# ----------------------------------------------------------------------------
# Constant matrices (cached per (H, W)): directional pooling + broadcast-back.
# All entries are 0/1, so they are exact in bfloat16; the mean scaling (1/W,
# 1/H) is applied inside the kernel in float32.
# ----------------------------------------------------------------------------
@functools.lru_cache(maxsize=None)
def _constants(H, W):
    HW = H * W
    ii, jj = np.meshgrid(np.arange(H), np.arange(W), indexing="ij")
    hw = (ii * W + jj).ravel()
    ih = ii.ravel()
    jw = jj.ravel()

    pool_h = np.zeros((HW, H), np.float32)   # sum over W -> x_h strip
    pool_h[hw, ih] = 1.0
    pool_w = np.zeros((HW, W), np.float32)   # sum over H -> x_w strip
    pool_w[hw, jw] = 1.0

    th = np.zeros((H, HW), np.float32)       # broadcast a_h[:, i] over row i
    th[ih, hw] = 1.0
    tw = np.zeros((W, HW), np.float32)       # broadcast a_w[:, j] over col j
    tw[jw, hw] = 1.0

    as_bf16 = lambda a: jnp.asarray(a, jnp.bfloat16)
    return as_bf16(pool_h), as_bf16(pool_w), as_bf16(th), as_bf16(tw)


# ----------------------------------------------------------------------------
# Fused kernel: one batch block (block_batch samples) per grid step.
# ----------------------------------------------------------------------------
def _coord_att_kernel(x_ref, ph_ref, pw_ref, w1_ref, b1_ref, wh_ref, bh_ref,
                      ww_ref, bw_ref, th_ref, tw_ref, o_ref, *, inv_w, inv_h):
    # Grid-invariant operands: read once per grid step (hoisted out of the loop).
    ph, pw = ph_ref[...], pw_ref[...]
    th, tw = th_ref[...], tw_ref[...]
    w1, b1 = w1_ref[...], b1_ref[...]
    wh, bh = wh_ref[...], bh_ref[...]
    ww, bw = ww_ref[...], bw_ref[...]

    def attention(x16, pool, inv_len, wdir, bdir, bcast):
        # Directional average pool (0/1 sum-matmul, f32 mean scale), then
        # 1x1 conv (+ folded BN) -> h_swish -> 1x1 conv -> sigmoid, and a 0/1
        # matmul broadcasting the attention strip back onto the H*W lane axis.
        y0 = jnp.dot(x16, pool, preferred_element_type=jnp.float32) * inv_len
        y1 = jnp.dot(w1, y0.astype(jnp.bfloat16),
                     preferred_element_type=jnp.float32) + b1
        y1 = y1 * (jnp.clip(y1 + 3.0, 0.0, 6.0) * (1.0 / 6.0))        # h_swish
        z = jnp.dot(wdir, y1.astype(jnp.bfloat16),
                    preferred_element_type=jnp.float32) + bdir
        a = pl.reciprocal(1.0 + jnp.exp(-z), approx=True)             # sigmoid (EUP)
        return jnp.dot(a.astype(jnp.bfloat16), bcast,
                       preferred_element_type=jnp.float32)            # (oup, HW)

    # Static unroll over the (small) batch block.
    for b in range(x_ref.shape[0]):
        x = x_ref[b]                                    # (C, HW) float32
        x16 = x.astype(jnp.bfloat16)
        a_h = attention(x16, ph, inv_w, wh, bh, th)     # (oup, HW)
        a_w = attention(x16, pw, inv_h, ww, bw, tw)     # (oup, HW)
        o_ref[b] = (x * a_h * a_w).astype(o_ref.dtype)


# ----------------------------------------------------------------------------
# Host wrapper.
# ----------------------------------------------------------------------------
def coord_att_pallas(x, w1, b1, bn_gamma, bn_beta, bn_mean, bn_var,
                     w_h, b_h, w_w, b_w, *, eps=1e-5, block_batch=None):
    """CoordAtt forward. x: (N, C, H, W) float32 NCHW (matches the PyTorch module)."""
    N, C, H, W = x.shape
    mip = w1.shape[0]
    oup = w_h.shape[0]
    assert oup == C, "identity * a_w * a_h requires oup == inp"
    HW = H * W

    # Fold inference-mode BatchNorm into the 1x1 conv (weights cast to bf16,
    # biases kept in f32 so they add onto the f32 accumulator).
    # TODO(synk): training-mode BN (batch statistics) is not implemented.
    scale = (bn_gamma / jnp.sqrt(bn_var + eps)).astype(jnp.float32)
    w1f = (w1.astype(jnp.float32) * scale[:, None]).astype(jnp.bfloat16)
    b1f = ((b1 - bn_mean) * scale + bn_beta).astype(jnp.float32).reshape(mip, 1)
    whf = w_h.astype(jnp.bfloat16)
    wwf = w_w.astype(jnp.bfloat16)
    bhf = b_h.astype(jnp.float32).reshape(oup, 1)
    bwf = b_w.astype(jnp.float32).reshape(oup, 1)

    pool_h, pool_w, th, tw = _constants(H, W)

    # Flattened-spatial, lane-dense layout (contiguous -> free reshape).
    # I/O stays f32 so the identity path is exact; bf16 I/O is a model-level
    # choice that would halve HBM traffic if the surrounding model tolerates it.
    x_flat = x.reshape(N, C, HW).astype(jnp.float32)

    # Batch several samples per grid step (amortizes per-step overhead) while
    # keeping >= 2 grid steps so both v7x TensorCores get work when N > 1.
    if block_batch is None:
        block_batch = max(1, min(4, N // 2))
    block_batch = max(1, min(block_batch, N))
    num_blocks = pl.cdiv(N, block_batch)

    # TODO(synk): for very large C*H*W (a whole sample no longer fits VMEM),
    # split into a strip kernel (a_h/a_w) + a tiled elementwise apply kernel.

    # Cost estimate for XLA's scheduler.
    flops_per_sample = (
        2 * C * HW * (H + W)          # directional pools
        + 2 * mip * C * (H + W)       # conv1 (+folded BN)
        + 6 * mip * (H + W)           # h_swish
        + 2 * oup * mip * (H + W)     # conv_h / conv_w
        + 2 * oup * (H + W) * HW      # broadcast-back
        + 3 * C * HW                  # identity * a_h * a_w
    )
    const_bytes = 2 * (HW * H + HW * W + H * HW + W * HW)            # bf16 pool/bcast
    weight_bytes = 2 * (mip * C + 2 * oup * mip) + 4 * (mip + 2 * oup)
    cost = pl.CostEstimate(flops=int(N * flops_per_sample),
                           transcendentals=int(N * oup * (H + W)),
                           bytes_accessed=int(2 * N * C * HW * 4
                                              + const_bytes + weight_bytes))

    kernel = functools.partial(_coord_att_kernel, inv_w=1.0 / W, inv_h=1.0 / H)

    def build(single_buffer_consts):
        def const_spec(shape):
            if single_buffer_consts:
                # Grid-invariant blocks: a single VMEM buffer is enough.
                return pl.BlockSpec(shape, lambda i: (0, 0),
                                    pipeline_mode=pl.Buffered(1))
            return pl.BlockSpec(shape, lambda i: (0, 0))

        # Explicit VMEM budget: double-buffered x/out blocks + constants + headroom.
        io_block_bytes = block_batch * C * HW * 4
        n_const_buf = 1 if single_buffer_consts else 2
        vmem_limit = (4 * io_block_bytes
                      + n_const_buf * (const_bytes + weight_bytes)
                      + (8 << 20))
        vmem_limit = int(min(max(vmem_limit, 32 << 20), 64 << 20))

        grid_spec = pltpu.PrefetchScalarGridSpec(
            num_scalar_prefetch=0,
            grid=(num_blocks,),
            in_specs=[
                pl.BlockSpec((block_batch, C, HW), lambda i: (i, 0, 0)),  # x
                const_spec((HW, H)),        # pool_h (sum over W)
                const_spec((HW, W)),        # pool_w (sum over H)
                const_spec((mip, C)),       # conv1 weight (BN folded)
                const_spec((mip, 1)),       # conv1 bias   (BN folded)
                const_spec((oup, mip)),     # conv_h weight
                const_spec((oup, 1)),       # conv_h bias
                const_spec((oup, mip)),     # conv_w weight
                const_spec((oup, 1)),       # conv_w bias
                const_spec((H, HW)),        # h broadcast-back
                const_spec((W, HW)),        # w broadcast-back
            ],
            out_specs=pl.BlockSpec((block_batch, C, HW), lambda i: (i, 0, 0)),
        )
        return pl.pallas_call(
            kernel,
            out_shape=jax.ShapeDtypeStruct((N, C, HW), jnp.float32),
            grid_spec=grid_spec,
            compiler_params=pltpu.CompilerParams(
                dimension_semantics=("parallel",),
                vmem_limit_bytes=vmem_limit,
            ),
            cost_estimate=cost,
        )

    args = (x_flat, pool_h, pool_w, w1f, b1f, whf, bhf, wwf, bwf, th, tw)
    try:
        out_flat = jax.block_until_ready(build(True)(*args))
    except Exception:
        # Fallback if this jax build rejects per-operand pipeline_mode:
        # identical kernel, default double-buffered constants.
        out_flat = jax.block_until_ready(build(False)(*args))

    return out_flat.reshape(N, C, H, W)


# ----------------------------------------------------------------------------
# Pure-JAX reference (mirrors the PyTorch forward, inference-mode BN).
# ----------------------------------------------------------------------------
def coord_att_ref(x, w1, b1, bn_gamma, bn_beta, bn_mean, bn_var,
                  w_h, b_h, w_w, b_w, eps=1e-5):
    n, c, h, w = x.shape
    x_h = jnp.mean(x, axis=3, keepdims=True)                                  # (n,c,h,1)
    x_w = jnp.transpose(jnp.mean(x, axis=2, keepdims=True), (0, 1, 3, 2))     # (n,c,w,1)
    y = jnp.concatenate([x_h, x_w], axis=2)                                   # (n,c,h+w,1)
    y = jnp.einsum('mc,nchw->nmhw', w1, y) + b1.reshape(1, -1, 1, 1)
    y = (y - bn_mean.reshape(1, -1, 1, 1)) / jnp.sqrt(bn_var.reshape(1, -1, 1, 1) + eps)
    y = y * bn_gamma.reshape(1, -1, 1, 1) + bn_beta.reshape(1, -1, 1, 1)
    y = y * (jnp.clip(y + 3.0, 0.0, 6.0) / 6.0)                               # h_swish
    y_h = y[:, :, :h, :]
    y_w = jnp.transpose(y[:, :, h:, :], (0, 1, 3, 2))
    a_h = jax.nn.sigmoid(jnp.einsum('om,nmhw->nohw', w_h, y_h) + b_h.reshape(1, -1, 1, 1))
    a_w = jax.nn.sigmoid(jnp.einsum('om,nmhw->nohw', w_w, y_w) + b_w.reshape(1, -1, 1, 1))
    return x * a_w * a_h


if __name__ == "__main__":
    # N=4 so the default block_batch=2 exercises both multi-sample blocks and
    # two grid steps (one per v7x TensorCore).
    N, C, H, W = 4, 4, 16, 16
    reduction = 1
    inp = oup = C
    mip = max(8, inp // reduction)

    key = jax.random.PRNGKey(0)
    ks = jax.random.split(key, 11)
    x = jax.random.normal(ks[0], (N, C, H, W), jnp.float32)
    w1 = jax.random.normal(ks[1], (mip, inp), jnp.float32) * 0.3
    b1 = jax.random.normal(ks[2], (mip,), jnp.float32) * 0.1
    bn_gamma = 1.0 + 0.1 * jax.random.normal(ks[3], (mip,), jnp.float32)
    bn_beta = 0.1 * jax.random.normal(ks[4], (mip,), jnp.float32)
    bn_mean = 0.1 * jax.random.normal(ks[5], (mip,), jnp.float32)
    bn_var = jax.random.uniform(ks[6], (mip,), jnp.float32, 0.5, 1.5)
    w_h = jax.random.normal(ks[7], (oup, mip), jnp.float32) * 0.3
    b_h = jax.random.normal(ks[8], (oup,), jnp.float32) * 0.1
    w_w = jax.random.normal(ks[9], (oup, mip), jnp.float32) * 0.3
    b_w = jax.random.normal(ks[10], (oup,), jnp.float32) * 0.1

    out = coord_att_pallas(x, w1, b1, bn_gamma, bn_beta, bn_mean, bn_var,
                           w_h, b_h, w_w, b_w, eps=1e-5)
    out = jax.block_until_ready(out)

    ref = coord_att_ref(x, w1, b1, bn_gamma, bn_beta, bn_mean, bn_var,
                        w_h, b_h, w_w, b_w, eps=1e-5)

    assert out.shape == (N, C, H, W)
    # bf16 MXU operands with f32 accumulation -> bf16-level tolerance.
    np.testing.assert_allclose(np.asarray(out), np.asarray(ref), rtol=2e-2, atol=2e-2)
    print("KERNEL_OK")
</pallas_src>

<mosaic_0001>
module attributes {stable_mosaic.version = 11 : i64} {
  func.func @_coord_att_kernel(%arg0: i32, %arg1: memref<2x4x256xf32, #tpu.memory_space<vmem>>, %arg2: memref<256x16xbf16, #tpu.memory_space<vmem>>, %arg3: memref<256x16xbf16, #tpu.memory_space<vmem>>, %arg4: memref<8x4xbf16, #tpu.memory_space<vmem>>, %arg5: memref<8x1xf32, #tpu.memory_space<vmem>>, %arg6: memref<4x8xbf16, #tpu.memory_space<vmem>>, %arg7: memref<4x1xf32, #tpu.memory_space<vmem>>, %arg8: memref<4x8xbf16, #tpu.memory_space<vmem>>, %arg9: memref<4x1xf32, #tpu.memory_space<vmem>>, %arg10: memref<16x256xbf16, #tpu.memory_space<vmem>>, %arg11: memref<16x256xbf16, #tpu.memory_space<vmem>>, %arg12: memref<2x4x256xf32, #tpu.memory_space<vmem>>) attributes {dimension_semantics = [#tpu.dimension_semantics<parallel>], iteration_bounds = array<i64: 2>, scalar_prefetch = 0 : i64, scratch_operands = 0 : i64, tpu.core_type = #tpu.core_type<tc>, window_params = [{transform_indices = @transform_0, window_bounds = array<i64: 2, 4, 256>}, {pipeline_mode = #tpu.pipeline_mode<synchronous>, transform_indices = @transform_1, window_bounds = array<i64: 256, 16>}, {pipeline_mode = #tpu.pipeline_mode<synchronous>, transform_indices = @transform_2, window_bounds = array<i64: 256, 16>}, {pipeline_mode = #tpu.pipeline_mode<synchronous>, transform_indices = @transform_3, window_bounds = array<i64: 8, 4>}, {pipeline_mode = #tpu.pipeline_mode<synchronous>, transform_indices = @transform_4, window_bounds = array<i64: 8, 1>}, {pipeline_mode = #tpu.pipeline_mode<synchronous>, transform_indices = @transform_5, window_bounds = array<i64: 4, 8>}, {pipeline_mode = #tpu.pipeline_mode<synchronous>, transform_indices = @transform_6, window_bounds = array<i64: 4, 1>}, {pipeline_mode = #tpu.pipeline_mode<synchronous>, transform_indices = @transform_7, window_bounds = array<i64: 4, 8>}, {pipeline_mode = #tpu.pipeline_mode<synchronous>, transform_indices = @transform_8, window_bounds = array<i64: 4, 1>}, {pipeline_mode = #tpu.pipeline_mode<synchronous>, transform_indices = @transform_9, window_bounds = array<i64: 16, 256>}, {pipeline_mode = #tpu.pipeline_mode<synchronous>, transform_indices = @transform_10, window_bounds = array<i64: 16, 256>}, {transform_indices = @transform_11, window_bounds = array<i64: 2, 4, 256>}]} {
    %c0 = arith.constant 0 : index
    %c0_0 = arith.constant 0 : index
    %0 = vector.load %arg2[%c0, %c0_0] : memref<256x16xbf16, #tpu.memory_space<vmem>>, vector<256x16xbf16>
    %c0_1 = arith.constant 0 : index
    %c0_2 = arith.constant 0 : index
    %1 = vector.load %arg3[%c0_1, %c0_2] : memref<256x16xbf16, #tpu.memory_space<vmem>>, vector<256x16xbf16>
    %c0_3 = arith.constant 0 : index
    %c0_4 = arith.constant 0 : index
    %2 = vector.load %arg10[%c0_3, %c0_4] : memref<16x256xbf16, #tpu.memory_space<vmem>>, vector<16x256xbf16>
    %c0_5 = arith.constant 0 : index
    %c0_6 = arith.constant 0 : index
    %3 = vector.load %arg11[%c0_5, %c0_6] : memref<16x256xbf16, #tpu.memory_space<vmem>>, vector<16x256xbf16>
    %c0_7 = arith.constant 0 : index
    %c0_8 = arith.constant 0 : index
    %4 = vector.load %arg4[%c0_7, %c0_8] : memref<8x4xbf16, #tpu.memory_space<vmem>>, vector<8x4xbf16>
    %c0_9 = arith.constant 0 : index
    %c0_10 = arith.constant 0 : index
    %5 = vector.load %arg5[%c0_9, %c0_10] : memref<8x1xf32, #tpu.memory_space<vmem>>, vector<8x1xf32>
    %c0_11 = arith.constant 0 : index
    %c0_12 = arith.constant 0 : index
    %6 = vector.load %arg6[%c0_11, %c0_12] : memref<4x8xbf16, #tpu.memory_space<vmem>>, vector<4x8xbf16>
    %c0_13 = arith.constant 0 : index
    %c0_14 = arith.constant 0 : index
    %7 = vector.load %arg7[%c0_13, %c0_14] : memref<4x1xf32, #tpu.memory_space<vmem>>, vector<4x1xf32>
    %c0_15 = arith.constant 0 : index
    %c0_16 = arith.constant 0 : index
    %8 = vector.load %arg8[%c0_15, %c0_16] : memref<4x8xbf16, #tpu.memory_space<vmem>>, vector<4x8xbf16>
    %c0_17 = arith.constant 0 : index
    %c0_18 = arith.constant 0 : index
    %9 = vector.load %arg9[%c0_17, %c0_18] : memref<4x1xf32, #tpu.memory_space<vmem>>, vector<4x1xf32>
    %c0_19 = arith.constant 0 : index
    %c0_20 = arith.constant 0 : index
    %c0_21 = arith.constant 0 : index
    %10 = vector.load %arg1[%c0_19, %c0_20, %c0_21] : memref<2x4x256xf32, #tpu.memory_space<vmem>>, vector<1x4x256xf32>
    %11 = vector.shape_cast %10 : vector<1x4x256xf32> to vector<4x256xf32>
    %12 = arith.truncf %11 : vector<4x256xf32> to vector<4x256xbf16>
    %cst = arith.constant dense<0.000000e+00> : vector<4x16xf32>
    %13 = tpu.matmul %12, %0, %cst {dimension_numbers = #tpu.dot_dimension_numbers<[1], [0], [0], [1], [0, 0, 1, 1], [], []>} : vector<4x256xbf16>, vector<256x16xbf16>, vector<4x16xf32> -> vector<4x16xf32>
    %cst_22 = arith.constant 6.250000e-02 : f32
    %14 = vector.broadcast %cst_22 : f32 to vector<4x16xf32>
    %15 = arith.mulf %13, %14 : vector<4x16xf32>
    %16 = arith.truncf %15 : vector<4x16xf32> to vector<4x16xbf16>
    %cst_23 = arith.constant dense<0.000000e+00> : vector<8x16xf32>
    %17 = tpu.matmul %4, %16, %cst_23 {dimension_numbers = #tpu.dot_dimension_numbers<[1], [0], [0], [1], [0, 0, 1, 1], [], []>} : vector<8x4xbf16>, vector<4x16xbf16>, vector<8x16xf32> -> vector<8x16xf32>
    %18 = vector.broadcast %5 : vector<8x1xf32> to vector<8x16xf32>
    %19 = arith.addf %17, %18 : vector<8x16xf32>
    %cst_24 = arith.constant 3.000000e+00 : f32
    %20 = vector.broadcast %cst_24 : f32 to vector<8x16xf32>
    %21 = arith.addf %19, %20 : vector<8x16xf32>
    %cst_25 = arith.constant 0.000000e+00 : f32
    %cst_26 = arith.constant 6.000000e+00 : f32
    %22 = vector.broadcast %cst_25 : f32 to vector<8x16xf32>
    %23 = arith.maximumf %22, %21 : vector<8x16xf32>
    %24 = vector.broadcast %cst_26 : f32 to vector<8x16xf32>
    %25 = arith.minimumf %24, %23 : vector<8x16xf32>
    %cst_27 = arith.constant 0.166666672 : f32
    %26 = vector.broadcast %cst_27 : f32 to vector<8x16xf32>
    %27 = arith.mulf %25, %26 : vector<8x16xf32>
    %28 = arith.mulf %19, %27 : vector<8x16xf32>
    %29 = arith.truncf %28 : vector<8x16xf32> to vector<8x16xbf16>
    %cst_28 = arith.constant dense<0.000000e+00> : vector<4x16xf32>
    %30 = tpu.matmul %6, %29, %cst_28 {dimension_numbers = #tpu.dot_dimension_numbers<[1], [0], [0], [1], [0, 0, 1, 1], [], []>} : vector<4x8xbf16>, vector<8x16xbf16>, vector<4x16xf32> -> vector<4x16xf32>
    %31 = vector.broadcast %7 : vector<4x1xf32> to vector<4x16xf32>
    %32 = arith.addf %30, %31 : vector<4x16xf32>
    %cst_29 = arith.constant 0.000000e+00 : f32
    %33 = vector.broadcast %cst_29 : f32 to vector<4x16xf32>
    %34 = arith.subf %33, %32 : vector<4x16xf32>
    %35 = math.exp %34 : vector<4x16xf32>
    %cst_30 = arith.constant 1.000000e+00 : f32
    %36 = vector.broadcast %cst_30 : f32 to vector<4x16xf32>
    %37 = arith.addf %36, %35 : vector<4x16xf32>
    %38 = tpu.reciprocal %37 {approx = true} : vector<4x16xf32> -> vector<4x16xf32>
    %39 = arith.truncf %38 : vector<4x16xf32> to vector<4x16xbf16>
    %cst_31 = arith.constant dense<0.000000e+00> : vector<4x256xf32>
    %40 = tpu.matmul %39, %2, %cst_31 {dimension_numbers = #tpu.dot_dimension_numbers<[1], [0], [0], [1], [0, 0, 1, 1], [], []>} : vector<4x16xbf16>, vector<16x256xbf16>, vector<4x256xf32> -> vector<4x256xf32>
    %cst_32 = arith.constant dense<0.000000e+00> : vector<4x16xf32>
    %41 = tpu.matmul %12, %1, %cst_32 {dimension_numbers = #tpu.dot_dimension_numbers<[1], [0], [0], [1], [0, 0, 1, 1], [], []>} : vector<4x256xbf16>, vector<256x16xbf16>, vector<4x16xf32> -> vector<4x16xf32>
    %cst_33 = arith.constant 6.250000e-02 : f32
    %42 = vector.broadcast %cst_33 : f32 to vector<4x16xf32>
    %43 = arith.mulf %41, %42 : vector<4x16xf32>
    %44 = arith.truncf %43 : vector<4x16xf32> to vector<4x16xbf16>
    %cst_34 = arith.constant dense<0.000000e+00> : vector<8x16xf32>
    %45 = tpu.matmul %4, %44, %cst_34 {dimension_numbers = #tpu.dot_dimension_numbers<[1], [0], [0], [1], [0, 0, 1, 1], [], []>} : vector<8x4xbf16>, vector<4x16xbf16>, vector<8x16xf32> -> vector<8x16xf32>
    %46 = vector.broadcast %5 : vector<8x1xf32> to vector<8x16xf32>
    %47 = arith.addf %45, %46 : vector<8x16xf32>
    %cst_35 = arith.constant 3.000000e+00 : f32
    %48 = vector.broadcast %cst_35 : f32 to vector<8x16xf32>
    %49 = arith.addf %47, %48 : vector<8x16xf32>
    %cst_36 = arith.constant 0.000000e+00 : f32
    %cst_37 = arith.constant 6.000000e+00 : f32
    %50 = vector.broadcast %cst_36 : f32 to vector<8x16xf32>
    %51 = arith.maximumf %50, %49 : vector<8x16xf32>
    %52 = vector.broadcast %cst_37 : f32 to vector<8x16xf32>
    %53 = arith.minimumf %52, %51 : vector<8x16xf32>
    %cst_38 = arith.constant 0.166666672 : f32
    %54 = vector.broadcast %cst_38 : f32 to vector<8x16xf32>
    %55 = arith.mulf %53, %54 : vector<8x16xf32>
    %56 = arith.mulf %47, %55 : vector<8x16xf32>
    %57 = arith.truncf %56 : vector<8x16xf32> to vector<8x16xbf16>
    %cst_39 = arith.constant dense<0.000000e+00> : vector<4x16xf32>
    %58 = tpu.matmul %8, %57, %cst_39 {dimension_numbers = #tpu.dot_dimension_numbers<[1], [0], [0], [1], [0, 0, 1, 1], [], []>} : vector<4x8xbf16>, vector<8x16xbf16>, vector<4x16xf32> -> vector<4x16xf32>
    %59 = vector.broadcast %9 : vector<4x1xf32> to vector<4x16xf32>
    %60 = arith.addf %58, %59 : vector<4x16xf32>
    %cst_40 = arith.constant 0.000000e+00 : f32
    %61 = vector.broadcast %cst_40 : f32 to vector<4x16xf32>
    %62 = arith.subf %61, %60 : vector<4x16xf32>
    %63 = math.exp %62 : vector<4x16xf32>
    %cst_41 = arith.constant 1.000000e+00 : f32
    %64 = vector.broadcast %cst_41 : f32 to vector<4x16xf32>
    %65 = arith.addf %64, %63 : vector<4x16xf32>
    %66 = tpu.reciprocal %65 {approx = true} : vector<4x16xf32> -> vector<4x16xf32>
    %67 = arith.truncf %66 : vector<4x16xf32> to vector<4x16xbf16>
    %cst_42 = arith.constant dense<0.000000e+00> : vector<4x256xf32>
    %68 = tpu.matmul %67, %3, %cst_42 {dimension_numbers = #tpu.dot_dimension_numbers<[1], [0], [0], [1], [0, 0, 1, 1], [], []>} : vector<4x16xbf16>, vector<16x256xbf16>, vector<4x256xf32> -> vector<4x256xf32>
    %69 = arith.mulf %11, %40 : vector<4x256xf32>
    %70 = arith.mulf %69, %68 : vector<4x256xf32>
    %c0_43 = arith.constant 0 : index
    %c0_44 = arith.constant 0 : index
    %c0_45 = arith.constant 0 : index
    %71 = vector.load %arg12[%c0_43, %c0_44, %c0_45] : memref<2x4x256xf32, #tpu.memory_space<vmem>>, vector<1x4x256xf32>
    %72 = vector.shape_cast %71 : vector<1x4x256xf32> to vector<4x256xf32>
    %73 = vector.shape_cast %70 : vector<4x256xf32> to vector<1x4x256xf32>
    tpu.vector_store %arg12[%c0_43, %c0_44, %c0_45], %73 {strides = array<i32>} : memref<2x4x256xf32, #tpu.memory_space<vmem>>, vector<1x4x256xf32>,
    %c1 = arith.constant 1 : index
    %c0_46 = arith.constant 0 : index
    %c0_47 = arith.constant 0 : index
    %74 = vector.load %arg1[%c1, %c0_46, %c0_47] : memref<2x4x256xf32, #tpu.memory_space<vmem>>, vector<1x4x256xf32>
    %75 = vector.shape_cast %74 : vector<1x4x256xf32> to vector<4x256xf32>
    %76 = arith.truncf %75 : vector<4x256xf32> to vector<4x256xbf16>
    %cst_48 = arith.constant dense<0.000000e+00> : vector<4x16xf32>
    %77 = tpu.matmul %76, %0, %cst_48 {dimension_numbers = #tpu.dot_dimension_numbers<[1], [0], [0], [1], [0, 0, 1, 1], [], []>} : vector<4x256xbf16>, vector<256x16xbf16>, vector<4x16xf32> -> vector<4x16xf32>
    %cst_49 = arith.constant 6.250000e-02 : f32
    %78 = vector.broadcast %cst_49 : f32 to vector<4x16xf32>
    %79 = arith.mulf %77, %78 : vector<4x16xf32>
    %80 = arith.truncf %79 : vector<4x16xf32> to vector<4x16xbf16>
    %cst_50 = arith.constant dense<0.000000e+00> : vector<8x16xf32>
    %81 = tpu.matmul %4, %80, %cst_50 {dimension_numbers = #tpu.dot_dimension_numbers<[1], [0], [0], [1], [0, 0, 1, 1], [], []>} : vector<8x4xbf16>, vector<4x16xbf16>, vector<8x16xf32> -> vector<8x16xf32>
    %82 = vector.broadcast %5 : vector<8x1xf32> to vector<8x16xf32>
    %83 = arith.addf %81, %82 : vector<8x16xf32>
    %cst_51 = arith.constant 3.000000e+00 : f32
    %84 = vector.broadcast %cst_51 : f32 to vector<8x16xf32>
    %85 = arith.addf %83, %84 : vector<8x16xf32>
    %cst_52 = arith.constant 0.000000e+00 : f32
    %cst_53 = arith.constant 6.000000e+00 : f32
    %86 = vector.broadcast %cst_52 : f32 to vector<8x16xf32>
    %87 = arith.maximumf %86, %85 : vector<8x16xf32>
    %88 = vector.broadcast %cst_53 : f32 to vector<8x16xf32>
    %89 = arith.minimumf %88, %87 : vector<8x16xf32>
    %cst_54 = arith.constant 0.166666672 : f32
    %90 = vector.broadcast %cst_54 : f32 to vector<8x16xf32>
    %91 = arith.mulf %89, %90 : vector<8x16xf32>
    %92 = arith.mulf %83, %91 : vector<8x16xf32>
    %93 = arith.truncf %92 : vector<8x16xf32> to vector<8x16xbf16>
    %cst_55 = arith.constant dense<0.000000e+00> : vector<4x16xf32>
    %94 = tpu.matmul %6, %93, %cst_55 {dimension_numbers = #tpu.dot_dimension_numbers<[1], [0], [0], [1], [0, 0, 1, 1], [], []>} : vector<4x8xbf16>, vector<8x16xbf16>, vector<4x16xf32> -> vector<4x16xf32>
    %95 = vector.broadcast %7 : vector<4x1xf32> to vector<4x16xf32>
    %96 = arith.addf %94, %95 : vector<4x16xf32>
    %cst_56 = arith.constant 0.000000e+00 : f32
    %97 = vector.broadcast %cst_56 : f32 to vector<4x16xf32>
    %98 = arith.subf %97, %96 : vector<4x16xf32>
    %99 = math.exp %98 : vector<4x16xf32>
    %cst_57 = arith.constant 1.000000e+00 : f32
    %100 = vector.broadcast %cst_57 : f32 to vector<4x16xf32>
    %101 = arith.addf %100, %99 : vector<4x16xf32>
    %102 = tpu.reciprocal %101 {approx = true} : vector<4x16xf32> -> vector<4x16xf32>
    %103 = arith.truncf %102 : vector<4x16xf32> to vector<4x16xbf16>
    %cst_58 = arith.constant dense<0.000000e+00> : vector<4x256xf32>
    %104 = tpu.matmul %103, %2, %cst_58 {dimension_numbers = #tpu.dot_dimension_numbers<[1], [0], [0], [1], [0, 0, 1, 1], [], []>} : vector<4x16xbf16>, vector<16x256xbf16>, vector<4x256xf32> -> vector<4x256xf32>
    %cst_59 = arith.constant dense<0.000000e+00> : vector<4x16xf32>
    %105 = tpu.matmul %76, %1, %cst_59 {dimension_numbers = #tpu.dot_dimension_numbers<[1], [0], [0], [1], [0, 0, 1, 1], [], []>} : vector<4x256xbf16>, vector<256x16xbf16>, vector<4x16xf32> -> vector<4x16xf32>
    %cst_60 = arith.constant 6.250000e-02 : f32
    %106 = vector.broadcast %cst_60 : f32 to vector<4x16xf32>
    %107 = arith.mulf %105, %106 : vector<4x16xf32>
    %108 = arith.truncf %107 : vector<4x16xf32> to vector<4x16xbf16>
    %cst_61 = arith.constant dense<0.000000e+00> : vector<8x16xf32>
    %109 = tpu.matmul %4, %108, %cst_61 {dimension_numbers = #tpu.dot_dimension_numbers<[1], [0], [0], [1], [0, 0, 1, 1], [], []>} : vector<8x4xbf16>, vector<4x16xbf16>, vector<8x16xf32> -> vector<8x16xf32>
    %110 = vector.broadcast %5 : vector<8x1xf32> to vector<8x16xf32>
    %111 = arith.addf %109, %110 : vector<8x16xf32>
    %cst_62 = arith.constant 3.000000e+00 : f32
    %112 = vector.broadcast %cst_62 : f32 to vector<8x16xf32>
    %113 = arith.addf %111, %112 : vector<8x16xf32>
    %cst_63 = arith.constant 0.000000e+00 : f32
    %cst_64 = arith.constant 6.000000e+00 : f32
    %114 = vector.broadcast %cst_63 : f32 to vector<8x16xf32>
    %115 = arith.maximumf %114, %113 : vector<8x16xf32>
    %116 = vector.broadcast %cst_64 : f32 to vector<8x16xf32>
    %117 = arith.minimumf %116, %115 : vector<8x16xf32>
    %cst_65 = arith.constant 0.166666672 : f32
    %118 = vector.broadcast %cst_65 : f32 to vector<8x16xf32>
    %119 = arith.mulf %117, %118 : vector<8x16xf32>
    %120 = arith.mulf %111, %119 : vector<8x16xf32>
    %121 = arith.truncf %120 : vector<8x16xf32> to vector<8x16xbf16>
    %cst_66 = arith.constant dense<0.000000e+00> : vector<4x16xf32>
    %122 = tpu.matmul %8, %121, %cst_66 {dimension_numbers = #tpu.dot_dimension_numbers<[1], [0], [0], [1], [0, 0, 1, 1], [], []>} : vector<4x8xbf16>, vector<8x16xbf16>, vector<4x16xf32> -> vector<4x16xf32>
    %123 = vector.broadcast %9 : vector<4x1xf32> to vector<4x16xf32>
    %124 = arith.addf %122, %123 : vector<4x16xf32>
    %cst_67 = arith.constant 0.000000e+00 : f32
    %125 = vector.broadcast %cst_67 : f32 to vector<4x16xf32>
    %126 = arith.subf %125, %124 : vector<4x16xf32>
    %127 = math.exp %126 : vector<4x16xf32>
    %cst_68 = arith.constant 1.000000e+00 : f32
    %128 = vector.broadcast %cst_68 : f32 to vector<4x16xf32>
    %129 = arith.addf %128, %127 : vector<4x16xf32>
    %130 = tpu.reciprocal %129 {approx = true} : vector<4x16xf32> -> vector<4x16xf32>
    %131 = arith.truncf %130 : vector<4x16xf32> to vector<4x16xbf16>
    %cst_69 = arith.constant dense<0.000000e+00> : vector<4x256xf32>
    %132 = tpu.matmul %131, %3, %cst_69 {dimension_numbers = #tpu.dot_dimension_numbers<[1], [0], [0], [1], [0, 0, 1, 1], [], []>} : vector<4x16xbf16>, vector<16x256xbf16>, vector<4x256xf32> -> vector<4x256xf32>
    %133 = arith.mulf %75, %104 : vector<4x256xf32>
    %134 = arith.mulf %133, %132 : vector<4x256xf32>
    %c1_70 = arith.constant 1 : index
    %c0_71 = arith.constant 0 : index
    %c0_72 = arith.constant 0 : index
    %135 = vector.load %arg12[%c1_70, %c0_71, %c0_72] : memref<2x4x256xf32, #tpu.memory_space<vmem>>, vector<1x4x256xf32>
    %136 = vector.shape_cast %135 : vector<1x4x256xf32> to vector<4x256xf32>
    %137 = vector.shape_cast %134 : vector<4x256xf32> to vector<1x4x256xf32>
    tpu.vector_store %arg12[%c1_70, %c0_71, %c0_72], %137 {strides = array<i32>} : memref<2x4x256xf32, #tpu.memory_space<vmem>>, vector<1x4x256xf32>,
    return
  }
  func.func @transform_0(%arg0: i32) -> (i32, i32, i32) {
    %c0_i32 = arith.constant 0 : i32
    %c0_i32_0 = arith.constant 0 : i32
    %c0_i32_1 = arith.constant 0 : i32
    return %arg0, %c0_i32, %c0_i32_0 : i32, i32, i32
  }
  func.func @transform_1(%arg0: i32) -> (i32, i32) {
    %c0_i32 = arith.constant 0 : i32
    %c0_i32_0 = arith.constant 0 : i32
    %c0_i32_1 = arith.constant 0 : i32
    return %c0_i32, %c0_i32_0 : i32, i32
  }
  func.func @transform_2(%arg0: i32) -> (i32, i32) {
    %c0_i32 = arith.constant 0 : i32
    %c0_i32_0 = arith.constant 0 : i32
    %c0_i32_1 = arith.constant 0 : i32
    return %c0_i32, %c0_i32_0 : i32, i32
  }
  func.func @transform_3(%arg0: i32) -> (i32, i32) {
    %c0_i32 = arith.constant 0 : i32
    %c0_i32_0 = arith.constant 0 : i32
    %c0_i32_1 = arith.constant 0 : i32
    return %c0_i32, %c0_i32_0 : i32, i32
  }
  func.func @transform_4(%arg0: i32) -> (i32, i32) {
    %c0_i32 = arith.constant 0 : i32
    %c0_i32_0 = arith.constant 0 : i32
    %c0_i32_1 = arith.constant 0 : i32
    return %c0_i32, %c0_i32_0 : i32, i32
  }
  func.func @transform_5(%arg0: i32) -> (i32, i32) {
    %c0_i32 = arith.constant 0 : i32
    %c0_i32_0 = arith.constant 0 : i32
    %c0_i32_1 = arith.constant 0 : i32
    return %c0_i32, %c0_i32_0 : i32, i32
  }
  func.func @transform_6(%arg0: i32) -> (i32, i32) {
    %c0_i32 = arith.constant 0 : i32
    %c0_i32_0 = arith.constant 0 : i32
    %c0_i32_1 = arith.constant 0 : i32
    return %c0_i32, %c0_i32_0 : i32, i32
  }
  func.func @transform_7(%arg0: i32) -> (i32, i32) {
    %c0_i32 = arith.constant 0 : i32
    %c0_i32_0 = arith.constant 0 : i32
    %c0_i32_1 = arith.constant 0 : i32
    return %c0_i32, %c0_i32_0 : i32, i32
  }
  func.func @transform_8(%arg0: i32) -> (i32, i32) {
    %c0_i32 = arith.constant 0 : i32
    %c0_i32_0 = arith.constant 0 : i32
    %c0_i32_1 = arith.constant 0 : i32
    return %c0_i32, %c0_i32_0 : i32, i32
  }
  func.func @transform_9(%arg0: i32) -> (i32, i32) {
    %c0_i32 = arith.constant 0 : i32
    %c0_i32_0 = arith.constant 0 : i32
    %c0_i32_1 = arith.constant 0 : i32
    return %c0_i32, %c0_i32_0 : i32, i32
  }
  func.func @transform_10(%arg0: i32) -> (i32, i32) {
    %c0_i32 = arith.constant 0 : i32
    %c0_i32_0 = arith.constant 0 : i32
    %c0_i32_1 = arith.constant 0 : i32
    return %c0_i32, %c0_i32_0 : i32, i32
  }
  func.func @transform_11(%arg0: i32) -> (i32, i32, i32) {
    %c0_i32 = arith.constant 0 : i32
    %c0_i32_0 = arith.constant 0 : i32
    %c0_i32_1 = arith.constant 0 : i32
    return %arg0, %c0_i32, %c0_i32_0 : i32, i32, i32
  }
}

module attributes {stable_mosaic.version = 11 : i64} {
  func.func @_coord_att_kernel(%arg0: i32, %arg1: memref<2x4x256xf32, #tpu.memory_space<vmem>>, %arg2: memref<256x16xbf16, #tpu.memory_space<vmem>>, %arg3: memref<256x16xbf16, #tpu.memory_space<vmem>>, %arg4: memref<8x4xbf16, #tpu.memory_space<vmem>>, %arg5: memref<8x1xf32, #tpu.memory_space<vmem>>, %arg6: memref<4x8xbf16, #tpu.memory_space<vmem>>, %arg7: memref<4x1xf32, #tpu.memory_space<vmem>>, %arg8: memref<4x8xbf16, #tpu.memory_space<vmem>>, %arg9: memref<4x1xf32, #tpu.memory_space<vmem>>, %arg10: memref<16x256xbf16, #tpu.memory_space<vmem>>, %arg11: memref<16x256xbf16, #tpu.memory_space<vmem>>, %arg12: memref<2x4x256xf32, #tpu.memory_space<vmem>>) attributes {dimension_semantics = [#tpu.dimension_semantics<parallel>], iteration_bounds = array<i64: 2>, scalar_prefetch = 0 : i64, scratch_operands = 0 : i64, tpu.core_type = #tpu.core_type<tc>, window_params = [{transform_indices = @transform_0, window_bounds = array<i64: 2, 4, 256>}, {pipeline_mode = #tpu.pipeline_mode<synchronous>, transform_indices = @transform_1, window_bounds = array<i64: 256, 16>}, {pipeline_mode = #tpu.pipeline_mode<synchronous>, transform_indices = @transform_2, window_bounds = array<i64: 256, 16>}, {pipeline_mode = #tpu.pipeline_mode<synchronous>, transform_indices = @transform_3, window_bounds = array<i64: 8, 4>}, {pipeline_mode = #tpu.pipeline_mode<synchronous>, transform_indices = @transform_4, window_bounds = array<i64: 8, 1>}, {pipeline_mode = #tpu.pipeline_mode<synchronous>, transform_indices = @transform_5, window_bounds = array<i64: 4, 8>}, {pipeline_mode = #tpu.pipeline_mode<synchronous>, transform_indices = @transform_6, window_bounds = array<i64: 4, 1>}, {pipeline_mode = #tpu.pipeline_mode<synchronous>, transform_indices = @transform_7, window_bounds = array<i64: 4, 8>}, {pipeline_mode = #tpu.pipeline_mode<synchronous>, transform_indices = @transform_8, window_bounds = array<i64: 4, 1>}, {pipeline_mode = #tpu.pipeline_mode<synchronous>, transform_indices = @transform_9, window_bounds = array<i64: 16, 256>}, {pipeline_mode = #tpu.pipeline_mode<synchronous>, transform_indices = @transform_10, window_bounds = array<i64: 16, 256>}, {transform_indices = @transform_11, window_bounds = array<i64: 2, 4, 256>}]} {
    %c0 = arith.constant 0 : index
    %c0_0 = arith.constant 0 : index
    %0 = vector.load %arg2[%c0, %c0_0] : memref<256x16xbf16, #tpu.memory_space<vmem>>, vector<256x16xbf16>
    %c0_1 = arith.constant 0 : index
    %c0_2 = arith.constant 0 : index
    %1 = vector.load %arg3[%c0_1, %c0_2] : memref<256x16xbf16, #tpu.memory_space<vmem>>, vector<256x16xbf16>
    %c0_3 = arith.constant 0 : index
    %c0_4 = arith.constant 0 : index
    %2 = vector.load %arg10[%c0_3, %c0_4] : memref<16x256xbf16, #tpu.memory_space<vmem>>, vector<16x256xbf16>
    %c0_5 = arith.constant 0 : index
    %c0_6 = arith.constant 0 : index
    %3 = vector.load %arg11[%c0_5, %c0_6] : memref<16x256xbf16, #tpu.memory_space<vmem>>, vector<16x256xbf16>
    %c0_7 = arith.constant 0 : index
    %c0_8 = arith.constant 0 : index
    %4 = vector.load %arg4[%c0_7, %c0_8] : memref<8x4xbf16, #tpu.memory_space<vmem>>, vector<8x4xbf16>
    %c0_9 = arith.constant 0 : index
    %c0_10 = arith.constant 0 : index
    %5 = vector.load %arg5[%c0_9, %c0_10] : memref<8x1xf32, #tpu.memory_space<vmem>>, vector<8x1xf32>
    %c0_11 = arith.constant 0 : index
    %c0_12 = arith.constant 0 : index
    %6 = vector.load %arg6[%c0_11, %c0_12] : memref<4x8xbf16, #tpu.memory_space<vmem>>, vector<4x8xbf16>
    %c0_13 = arith.constant 0 : index
    %c0_14 = arith.constant 0 : index
    %7 = vector.load %arg7[%c0_13, %c0_14] : memref<4x1xf32, #tpu.memory_space<vmem>>, vector<4x1xf32>
    %c0_15 = arith.constant 0 : index
    %c0_16 = arith.constant 0 : index
    %8 = vector.load %arg8[%c0_15, %c0_16] : memref<4x8xbf16, #tpu.memory_space<vmem>>, vector<4x8xbf16>
    %c0_17 = arith.constant 0 : index
    %c0_18 = arith.constant 0 : index
    %9 = vector.load %arg9[%c0_17, %c0_18] : memref<4x1xf32, #tpu.memory_space<vmem>>, vector<4x1xf32>
    %c0_19 = arith.constant 0 : index
    %c0_20 = arith.constant 0 : index
    %c0_21 = arith.constant 0 : index
    %10 = vector.load %arg1[%c0_19, %c0_20, %c0_21] : memref<2x4x256xf32, #tpu.memory_space<vmem>>, vector<1x4x256xf32>
    %11 = vector.shape_cast %10 : vector<1x4x256xf32> to vector<4x256xf32>
    %12 = arith.truncf %11 : vector<4x256xf32> to vector<4x256xbf16>
    %cst = arith.constant dense<0.000000e+00> : vector<4x16xf32>
    %13 = tpu.matmul %12, %0, %cst {dimension_numbers = #tpu.dot_dimension_numbers<[1], [0], [0], [1], [0, 0, 1, 1], [], []>} : vector<4x256xbf16>, vector<256x16xbf16>, vector<4x16xf32> -> vector<4x16xf32>
    %cst_22 = arith.constant 6.250000e-02 : f32
    %14 = vector.broadcast %cst_22 : f32 to vector<4x16xf32>
    %15 = arith.mulf %13, %14 : vector<4x16xf32>
    %16 = arith.truncf %15 : vector<4x16xf32> to vector<4x16xbf16>
    %cst_23 = arith.constant dense<0.000000e+00> : vector<8x16xf32>
    %17 = tpu.matmul %4, %16, %cst_23 {dimension_numbers = #tpu.dot_dimension_numbers<[1], [0], [0], [1], [0, 0, 1, 1], [], []>} : vector<8x4xbf16>, vector<4x16xbf16>, vector<8x16xf32> -> vector<8x16xf32>
    %18 = vector.broadcast %5 : vector<8x1xf32> to vector<8x16xf32>
    %19 = arith.addf %17, %18 : vector<8x16xf32>
    %cst_24 = arith.constant 3.000000e+00 : f32
    %20 = vector.broadcast %cst_24 : f32 to vector<8x16xf32>
    %21 = arith.addf %19, %20 : vector<8x16xf32>
    %cst_25 = arith.constant 0.000000e+00 : f32
    %cst_26 = arith.constant 6.000000e+00 : f32
    %22 = vector.broadcast %cst_25 : f32 to vector<8x16xf32>
    %23 = arith.maximumf %22, %21 : vector<8x16xf32>
    %24 = vector.broadcast %cst_26 : f32 to vector<8x16xf32>
    %25 = arith.minimumf %24, %23 : vector<8x16xf32>
    %cst_27 = arith.constant 0.166666672 : f32
    %26 = vector.broadcast %cst_27 : f32 to vector<8x16xf32>
    %27 = arith.mulf %25, %26 : vector<8x16xf32>
    %28 = arith.mulf %19, %27 : vector<8x16xf32>
    %29 = arith.truncf %28 : vector<8x16xf32> to vector<8x16xbf16>
    %cst_28 = arith.constant dense<0.000000e+00> : vector<4x16xf32>
    %30 = tpu.matmul %6, %29, %cst_28 {dimension_numbers = #tpu.dot_dimension_numbers<[1], [0], [0], [1], [0, 0, 1, 1], [], []>} : vector<4x8xbf16>, vector<8x16xbf16>, vector<4x16xf32> -> vector<4x16xf32>
    %31 = vector.broadcast %7 : vector<4x1xf32> to vector<4x16xf32>
    %32 = arith.addf %30, %31 : vector<4x16xf32>
    %cst_29 = arith.constant 0.000000e+00 : f32
    %33 = vector.broadcast %cst_29 : f32 to vector<4x16xf32>
    %34 = arith.subf %33, %32 : vector<4x16xf32>
    %35 = math.exp %34 : vector<4x16xf32>
    %cst_30 = arith.constant 1.000000e+00 : f32
    %36 = vector.broadcast %cst_30 : f32 to vector<4x16xf32>
    %37 = arith.addf %36, %35 : vector<4x16xf32>
    %38 = tpu.reciprocal %37 {approx = true} : vector<4x16xf32> -> vector<4x16xf32>
    %39 = arith.truncf %38 : vector<4x16xf32> to vector<4x16xbf16>
    %cst_31 = arith.constant dense<0.000000e+00> : vector<4x256xf32>
    %40 = tpu.matmul %39, %2, %cst_31 {dimension_numbers = #tpu.dot_dimension_numbers<[1], [0], [0], [1], [0, 0, 1, 1], [], []>} : vector<4x16xbf16>, vector<16x256xbf16>, vector<4x256xf32> -> vector<4x256xf32>
    %cst_32 = arith.constant dense<0.000000e+00> : vector<4x16xf32>
    %41 = tpu.matmul %12, %1, %cst_32 {dimension_numbers = #tpu.dot_dimension_numbers<[1], [0], [0], [1], [0, 0, 1, 1], [], []>} : vector<4x256xbf16>, vector<256x16xbf16>, vector<4x16xf32> -> vector<4x16xf32>
    %cst_33 = arith.constant 6.250000e-02 : f32
    %42 = vector.broadcast %cst_33 : f32 to vector<4x16xf32>
    %43 = arith.mulf %41, %42 : vector<4x16xf32>
    %44 = arith.truncf %43 : vector<4x16xf32> to vector<4x16xbf16>
    %cst_34 = arith.constant dense<0.000000e+00> : vector<8x16xf32>
    %45 = tpu.matmul %4, %44, %cst_34 {dimension_numbers = #tpu.dot_dimension_numbers<[1], [0], [0], [1], [0, 0, 1, 1], [], []>} : vector<8x4xbf16>, vector<4x16xbf16>, vector<8x16xf32> -> vector<8x16xf32>
    %46 = vector.broadcast %5 : vector<8x1xf32> to vector<8x16xf32>
    %47 = arith.addf %45, %46 : vector<8x16xf32>
    %cst_35 = arith.constant 3.000000e+00 : f32
    %48 = vector.broadcast %cst_35 : f32 to vector<8x16xf32>
    %49 = arith.addf %47, %48 : vector<8x16xf32>
    %cst_36 = arith.constant 0.000000e+00 : f32
    %cst_37 = arith.constant 6.000000e+00 : f32
    %50 = vector.broadcast %cst_36 : f32 to vector<8x16xf32>
    %51 = arith.maximumf %50, %49 : vector<8x16xf32>
    %52 = vector.broadcast %cst_37 : f32 to vector<8x16xf32>
    %53 = arith.minimumf %52, %51 : vector<8x16xf32>
    %cst_38 = arith.constant 0.166666672 : f32
    %54 = vector.broadcast %cst_38 : f32 to vector<8x16xf32>
    %55 = arith.mulf %53, %54 : vector<8x16xf32>
    %56 = arith.mulf %47, %55 : vector<8x16xf32>
    %57 = arith.truncf %56 : vector<8x16xf32> to vector<8x16xbf16>
    %cst_39 = arith.constant dense<0.000000e+00> : vector<4x16xf32>
    %58 = tpu.matmul %8, %57, %cst_39 {dimension_numbers = #tpu.dot_dimension_numbers<[1], [0], [0], [1], [0, 0, 1, 1], [], []>} : vector<4x8xbf16>, vector<8x16xbf16>, vector<4x16xf32> -> vector<4x16xf32>
    %59 = vector.broadcast %9 : vector<4x1xf32> to vector<4x16xf32>
    %60 = arith.addf %58, %59 : vector<4x16xf32>
    %cst_40 = arith.constant 0.000000e+00 : f32
    %61 = vector.broadcast %cst_40 : f32 to vector<4x16xf32>
    %62 = arith.subf %61, %60 : vector<4x16xf32>
    %63 = math.exp %62 : vector<4x16xf32>
    %cst_41 = arith.constant 1.000000e+00 : f32
    %64 = vector.broadcast %cst_41 : f32 to vector<4x16xf32>
    %65 = arith.addf %64, %63 : vector<4x16xf32>
    %66 = tpu.reciprocal %65 {approx = true} : vector<4x16xf32> -> vector<4x16xf32>
    %67 = arith.truncf %66 : vector<4x16xf32> to vector<4x16xbf16>
    %cst_42 = arith.constant dense<0.000000e+00> : vector<4x256xf32>
    %68 = tpu.matmul %67, %3, %cst_42 {dimension_numbers = #tpu.dot_dimension_numbers<[1], [0], [0], [1], [0, 0, 1, 1], [], []>} : vector<4x16xbf16>, vector<16x256xbf16>, vector<4x256xf32> -> vector<4x256xf32>
    %69 = arith.mulf %11, %40 : vector<4x256xf32>
    %70 = arith.mulf %69, %68 : vector<4x256xf32>
    %c0_43 = arith.constant 0 : index
    %c0_44 = arith.constant 0 : index
    %c0_45 = arith.constant 0 : index
    %71 = vector.load %arg12[%c0_43, %c0_44, %c0_45] : memref<2x4x256xf32, #tpu.memory_space<vmem>>, vector<1x4x256xf32>
    %72 = vector.shape_cast %71 : vector<1x4x256xf32> to vector<4x256xf32>
    %73 = vector.shape_cast %70 : vector<4x256xf32> to vector<1x4x256xf32>
    tpu.vector_store %arg12[%c0_43, %c0_44, %c0_45], %73 {strides = array<i32>} : memref<2x4x256xf32, #tpu.memory_space<vmem>>, vector<1x4x256xf32>,
    %c1 = arith.constant 1 : index
    %c0_46 = arith.constant 0 : index
    %c0_47 = arith.constant 0 : index
    %74 = vector.load %arg1[%c1, %c0_46, %c0_47] : memref<2x4x256xf32, #tpu.memory_space<vmem>>, vector<1x4x256xf32>
    %75 = vector.shape_cast %74 : vector<1x4x256xf32> to vector<4x256xf32>
    %76 = arith.truncf %75 : vector<4x256xf32> to vector<4x256xbf16>
    %cst_48 = arith.constant dense<0.000000e+00> : vector<4x16xf32>
    %77 = tpu.matmul %76, %0, %cst_48 {dimension_numbers = #tpu.dot_dimension_numbers<[1], [0], [0], [1], [0, 0, 1, 1], [], []>} : vector<4x256xbf16>, vector<256x16xbf16>, vector<4x16xf32> -> vector<4x16xf32>
    %cst_49 = arith.constant 6.250000e-02 : f32
    %78 = vector.broadcast %cst_49 : f32 to vector<4x16xf32>
    %79 = arith.mulf %77, %78 : vector<4x16xf32>
    %80 = arith.truncf %79 : vector<4x16xf32> to vector<4x16xbf16>
    %cst_50 = arith.constant dense<0.000000e+00> : vector<8x16xf32>
    %81 = tpu.matmul %4, %80, %cst_50 {dimension_numbers = #tpu.dot_dimension_numbers<[1], [0], [0], [1], [0, 0, 1, 1], [], []>} : vector<8x4xbf16>, vector<4x16xbf16>, vector<8x16xf32> -> vector<8x16xf32>
    %82 = vector.broadcast %5 : vector<8x1xf32> to vector<8x16xf32>
    %83 = arith.addf %81, %82 : vector<8x16xf32>
    %cst_51 = arith.constant 3.000000e+00 : f32
    %84 = vector.broadcast %cst_51 : f32 to vector<8x16xf32>
    %85 = arith.addf %83, %84 : vector<8x16xf32>
    %cst_52 = arith.constant 0.000000e+00 : f32
    %cst_53 = arith.constant 6.000000e+00 : f32
    %86 = vector.broadcast %cst_52 : f32 to vector<8x16xf32>
    %87 = arith.maximumf %86, %85 : vector<8x16xf32>
    %88 = vector.broadcast %cst_53 : f32 to vector<8x16xf32>
    %89 = arith.minimumf %88, %87 : vector<8x16xf32>
    %cst_54 = arith.constant 0.166666672 : f32
    %90 = vector.broadcast %cst_54 : f32 to vector<8x16xf32>
    %91 = arith.mulf %89, %90 : vector<8x16xf32>
    %92 = arith.mulf %83, %91 : vector<8x16xf32>
    %93 = arith.truncf %92 : vector<8x16xf32> to vector<8x16xbf16>
    %cst_55 = arith.constant dense<0.000000e+00> : vector<4x16xf32>
    %94 = tpu.matmul %6, %93, %cst_55 {dimension_numbers = #tpu.dot_dimension_numbers<[1], [0], [0], [1], [0, 0, 1, 1], [], []>} : vector<4x8xbf16>, vector<8x16xbf16>, vector<4x16xf32> -> vector<4x16xf32>
    %95 = vector.broadcast %7 : vector<4x1xf32> to vector<4x16xf32>
    %96 = arith.addf %94, %95 : vector<4x16xf32>
    %cst_56 = arith.constant 0.000000e+00 : f32
    %97 = vector.broadcast %cst_56 : f32 to vector<4x16xf32>
    %98 = arith.subf %97, %96 : vector<4x16xf32>
    %99 = math.exp %98 : vector<4x16xf32>
    %cst_57 = arith.constant 1.000000e+00 : f32
    %100 = vector.broadcast %cst_57 : f32 to vector<4x16xf32>
    %101 = arith.addf %100, %99 : vector<4x16xf32>
    %102 = tpu.reciprocal %101 {approx = true} : vector<4x16xf32> -> vector<4x16xf32>
    %103 = arith.truncf %102 : vector<4x16xf32> to vector<4x16xbf16>
    %cst_58 = arith.constant dense<0.000000e+00> : vector<4x256xf32>
    %104 = tpu.matmul %103, %2, %cst_58 {dimension_numbers = #tpu.dot_dimension_numbers<[1], [0], [0], [1], [0, 0, 1, 1], [], []>} : vector<4x16xbf16>, vector<16x256xbf16>, vector<4x256xf32> -> vector<4x256xf32>
    %cst_59 = arith.constant dense<0.000000e+00> : vector<4x16xf32>
    %105 = tpu.matmul %76, %1, %cst_59 {dimension_numbers = #tpu.dot_dimension_numbers<[1], [0], [0], [1], [0, 0, 1, 1], [], []>} : vector<4x256xbf16>, vector<256x16xbf16>, vector<4x16xf32> -> vector<4x16xf32>
    %cst_60 = arith.constant 6.250000e-02 : f32
    %106 = vector.broadcast %cst_60 : f32 to vector<4x16xf32>
    %107 = arith.mulf %105, %106 : vector<4x16xf32>
    %108 = arith.truncf %107 : vector<4x16xf32> to vector<4x16xbf16>
    %cst_61 = arith.constant dense<0.000000e+00> : vector<8x16xf32>
    %109 = tpu.matmul %4, %108, %cst_61 {dimension_numbers = #tpu.dot_dimension_numbers<[1], [0], [0], [1], [0, 0, 1, 1], [], []>} : vector<8x4xbf16>, vector<4x16xbf16>, vector<8x16xf32> -> vector<8x16xf32>
    %110 = vector.broadcast %5 : vector<8x1xf32> to vector<8x16xf32>
    %111 = arith.addf %109, %110 : vector<8x16xf32>
    %cst_62 = arith.constant 3.000000e+00 : f32
    %112 = vector.broadcast %cst_62 : f32 to vector<8x16xf32>
    %113 = arith.addf %111, %112 : vector<8x16xf32>
    %cst_63 = arith.constant 0.000000e+00 : f32
    %cst_64 = arith.constant 6.000000e+00 : f32
    %114 = vector.broadcast %cst_63 : f32 to vector<8x16xf32>
    %115 = arith.maximumf %114, %113 : vector<8x16xf32>
    %116 = vector.broadcast %cst_64 : f32 to vector<8x16xf32>
    %117 = arith.minimumf %116, %115 : vector<8x16xf32>
    %cst_65 = arith.constant 0.166666672 : f32
    %118 = vector.broadcast %cst_65 : f32 to vector<8x16xf32>
    %119 = arith.mulf %117, %118 : vector<8x16xf32>
    %120 = arith.mulf %111, %119 : vector<8x16xf32>
    %121 = arith.truncf %120 : vector<8x16xf32> to vector<8x16xbf16>
    %cst_66 = arith.constant dense<0.000000e+00> : vector<4x16xf32>
    %122 = tpu.matmul %8, %121, %cst_66 {dimension_numbers = #tpu.dot_dimension_numbers<[1], [0], [0], [1], [0, 0, 1, 1], [], []>} : vector<4x8xbf16>, vector<8x16xbf16>, vector<4x16xf32> -> vector<4x16xf32>
    %123 = vector.broadcast %9 : vector<4x1xf32> to vector<4x16xf32>
    %124 = arith.addf %122, %123 : vector<4x16xf32>
    %cst_67 = arith.constant 0.000000e+00 : f32
    %125 = vector.broadcast %cst_67 : f32 to vector<4x16xf32>
    %126 = arith.subf %125, %124 : vector<4x16xf32>
    %127 = math.exp %126 : vector<4x16xf32>
    %cst_68 = arith.constant 1.000000e+00 : f32
    %128 = vector.broadcast %cst_68 : f32 to vector<4x16xf32>
    %129 = arith.addf %128, %127 : vector<4x16xf32>
    %130 = tpu.reciprocal %129 {approx = true} : vector<4x16xf32> -> vector<4x16xf32>
    %131 = arith.truncf %130 : vector<4x16xf32> to vector<4x16xbf16>
    %cst_69 = arith.constant dense<0.000000e+00> : vector<4x256xf32>
    %132 = tpu.matmul %131, %3, %cst_69 {dimension_numbers = #tpu.dot_dimension_numbers<[1], [0], [0], [1], [0, 0, 1, 1], [], []>} : vector<4x16xbf16>, vector<16x256xbf16>, vector<4x256xf32> -> vector<4x256xf32>
    %133 = arith.mulf %75, %104 : vector<4x256xf32>
    %134 = arith.mulf %133, %132 : vector<4x256xf32>
    %c1_70 = arith.constant 1 : index
    %c0_71 = arith.constant 0 : index
    %c0_72 = arith.constant 0 : index
    %135 = vector.load %arg12[%c1_70, %c0_71, %c0_72] : memref<2x4x256xf32, #tpu.memory_space<vmem>>, vector<1x4x256xf32>
    %136 = vector.shape_cast %135 : vector<1x4x256xf32> to vector<4x256xf32>
    %137 = vector.shape_cast %134 : vector<4x256xf32> to vector<1x4x256xf32>
    tpu.vector_store %arg12[%c1_70, %c0_71, %c0_72], %137 {strides = array<i32>} : memref<2x4x256xf32, #tpu.memory_space<vmem>>, vector<1x4x256xf32>,
    return
  }
  func.func @transform_0(%arg0: i32) -> (i32, i32, i32) {
    %c0_i32 = arith.constant 0 : i32
    %c0_i32_0 = arith.constant 0 : i32
    %c0_i32_1 = arith.constant 0 : i32
    return %arg0, %c0_i32, %c0_i32_0 : i32, i32, i32
  }
  func.func @transform_1(%arg0: i32) -> (i32, i32) {
    %c0_i32 = arith.constant 0 : i32
    %c0_i32_0 = arith.constant 0 : i32
    %c0_i32_1 = arith.constant 0 : i32
    return %c0_i32, %c0_i32_0 : i32, i32
  }
  func.func @transform_2(%arg0: i32) -> (i32, i32) {
    %c0_i32 = arith.constant 0 : i32
    %c0_i32_0 = arith.constant 0 : i32
    %c0_i32_1 = arith.constant 0 : i32
    return %c0_i32, %c0_i32_0 : i32, i32
  }
  func.func @transform_3(%arg0: i32) -> (i32, i32) {
    %c0_i32 = arith.constant 0 : i32
    %c0_i32_0 = arith.constant 0 : i32
    %c0_i32_1 = arith.constant 0 : i32
    return %c0_i32, %c0_i32_0 : i32, i32
  }
  func.func @transform_4(%arg0: i32) -> (i32, i32) {
    %c0_i32 = arith.constant 0 : i32
    %c0_i32_0 = arith.constant 0 : i32
    %c0_i32_1 = arith.constant 0 : i32
    return %c0_i32, %c0_i32_0 : i32, i32
  }
  func.func @transform_5(%arg0: i32) -> (i32, i32) {
    %c0_i32 = arith.constant 0 : i32
    %c0_i32_0 = arith.constant 0 : i32
    %c0_i32_1 = arith.constant 0 : i32
    return %c0_i32, %c0_i32_0 : i32, i32
  }
  func.func @transform_6(%arg0: i32) -> (i32, i32) {
    %c0_i32 = arith.constant 0 : i32
    %c0_i32_0 = arith.constant 0 : i32
    %c0_i32_1 = arith.constant 0 : i32
    return %c0_i32, %c0_i32_0 : i32, i32
  }
  func.func @transform_7(%arg0: i32) -> (i32, i32) {
    %c0_i32 = arith.constant 0 : i32
    %c0_i32_0 = arith.constant 0 : i32
    %c0_i32_1 = arith.constant 0 : i32
    return %c0_i32, %c0_i32_0 : i32, i32
  }
  func.func @transform_8(%arg0: i32) -> (i32, i32) {
    %c0_i32 = arith.constant 0 : i32
    %c0_i32_0 = arith.constant 0 : i32
    %c0_i32_1 = arith.constant 0 : i32
    return %c0_i32, %c0_i32_0 : i32, i32
  }
  func.func @transform_9(%arg0: i32) -> (i32, i32) {
    %c0_i32 = arith.constant 0 : i32
    %c0_i32_0 = arith.constant 0 : i32
    %c0_i32_1 = arith.constant 0 : i32
    return %c0_i32, %c0_i32_0 : i32, i32
  }
  func.func @transform_10(%arg0: i32) -> (i32, i32) {
    %c0_i32 = arith.constant 0 : i32
    %c0_i32_0 = arith.constant 0 : i32
    %c0_i32_1 = arith.constant 0 : i32
    return %c0_i32, %c0_i32_0 : i32, i32
  }
  func.func @transform_11(%arg0: i32) -> (i32, i32, i32) {
    %c0_i32 = arith.constant 0 : i32
    %c0_i32_0 = arith.constant 0 : i32
    %c0_i32_1 = arith.constant 0 : i32
    return %arg0, %c0_i32, %c0_i32_0 : i32, i32, i32
  }
}

</mosaic_0001>

<bundles_post_ra>
// kernel: tpu_custom_call.1
= control target key start
LH: loop header
LB: loop body
LE: loop exit
PB: predicated region body
PF: predicated region fallthrough
CT: control target
= control target key end

     0   :  { %s2509_s0 = inlined_call_operand.vmem [shape: f32[4,4,256], index: 0, kind: input, shape index: {}]   ;;  %s2510_s1 = inlined_call_operand.vmem [shape: bf16[256,16], index: 1, kind: input, shape index: {}]   ;;  %s2511_s2 = inlined_call_operand.vmem [shape: bf16[256,16], index: 2, kind: input, shape index: {}]   ;;  %s2512_s3 = inlined_call_operand.vmem [shape: bf16[8,4], index: 3, kind: input, shape index: {}]   ;;  %s2513_s4 = inlined_call_operand.vmem [shape: f32[8,1], index: 4, kind: input, shape index: {}]   ;;  %s2514_s5 = inlined_call_operand.vmem [shape: bf16[4,8], index: 5, kind: input, shape index: {}]   ;;  %s2515_s6 = inlined_call_operand.vmem [shape: f32[4,1], index: 6, kind: input, shape index: {}]   ;;  %s2516_s7 = inlined_call_operand.vmem [shape: bf16[4,8], index: 7, kind: input, shape index: {}]   ;;  %s2517_s8 = inlined_call_operand.vmem [shape: f32[4,1], index: 8, kind: input, shape index: {}]   ;;  %s2518_s9 = inlined_call_operand.vmem [shape: bf16[16,256], index: 9, kind: input, shape index: {}]   ;;  %s2519_s10 = inlined_call_operand.vmem [shape: bf16[16,256], index: 10, kind: input, shape index: {}]   ;;  %s2520_s11 = inlined_call_operand.hbm [shape: f32[4,4,256], index: 11, kind: output, shape index: {}]  }
   0x1   :  { %2521 = sst [smem:[#allocation5_spill]] %s2509_s0 }
   0x2   :  { %16 = vsyncpa [#allocation3], 0 }
   0x3   :  { %18 = vsyncpa [#allocation3 + $0x1], 0  ;;  %s2007_s17 = smov 0   ;;  %s2009_s18 = smov 0  }
   0x4   :  { %s2011_s19 = smov 0   ;;  %s2013_s20 = smov 0  }
   0x5 LB: > { %s2028_s21 = sadd.s32 4294967295, %s1939_s20   ;;  %s1556_s22 = sadd.s32 4294967294, %s1939_s20   ;;  %s1939_s20 = sphi %s2013_s20, %s2528_s20   ;;  %s1935_s19 = sphi %s2011_s19, %s2527_s19   ;;  %s1931_s18 = sphi %s2009_s18, %s2526_s18   ;;  %s1927_s17 = sphi %s2007_s17, %s2525_s17  }
   0x6   : > { %s2032_s23 = sadd.s32 1, %s1939_s20   ;;  %s267_s24 = sadd.s32 1, %s1935_s19 }
   0x7   : > { %s264_s25 = ssub.s32 %s1939_s20, %s2032_s23  ;;  %p277_p0 = scmp.ne.s32.totalorder %s1935_s19, %s1931_s18 }
   0x8   : > { %p265_p1 = scmp.eq.s32.totalorder %s264_s25, 0  ;;  %p278_p2 = scmp.eq.s32.totalorder %s2028_s21, 1 }
   0x9   : > { %p283_p3 = scmp.ne.s32.totalorder %s1931_s18, %s1927_s17  ;;  %p284_p4 = scmp.eq.s32.totalorder %s1556_s22, 1 }
   0xa   : > { %s2043_s26 = scalar_select %p265_p1, %s1935_s19, %s267_s24  }
   0xb   : > { %p2045_p5 = por %p278_p2, %p277_p0  ;;  %p2049_p6 = por %p284_p4, %p283_p3 }
   0xc   : > { %p1559_p7 = scmp.ge.s32.totalorder %s1939_s20, 1  ;;  %p342_p8 = scmp.lt.s32.totalorder %s1939_s20, 3 }
   0xe   : > { %p343_p9 = pnand %p1559_p7, %p342_p8 }
   0xf   : > { %v2058_v0 = vld [vmem:[%s2510_s1 + $0x40] sm:$0xff] (!%p343_p9)   ;;  %s1561_s12 = sshll.u32 (!%p343_p9), %s2028_s21, 1  ;;  %v2070_v2 = vld [vmem:[%s2510_s1 + $0x48] sm:$0xff] (!%p343_p9)   ;;  %v2082_v4 = vld [vmem:[%s2510_s1 + $0x50] sm:$0xff] (!%p343_p9)   ;;  %s2524_s0 = sld [smem:[#allocation5_spill]] (!%p343_p9)  ;;  %v1941_v20 = vmov (!%p343_p9), 0.0  }
  0x10   : > { %346 = sbr.rel (%p343_p9) target bundleno = 2917 (0xb65), region = 64  ;;  %v2064_v1 = vld [vmem:[%s2510_s1] sm:$0xff] (!%p343_p9)   ;;  %1623 = vmatprep.subr.bf16.mxu0 (!%p343_p9), %v2058_v0  ;;  %p384_p10 = scmp.lt.s32.totalorder (!%p343_p9), %s1561_s12, 3  ;;  %v2076_v3 = vld [vmem:[%s2510_s1 + $0x8] sm:$0xff] (!%p343_p9)   ;;  %v2088_v5 = vld [vmem:[%s2510_s1 + $0x10] sm:$0xff] (!%p343_p9)   ;;  %1727 = vmatprep.subr.bf16.mxu1 (!%p343_p9), %v1941_v20  ;;  %vm1942_vm0 = vmmov (!%p343_p9), 0  }
  0x11   : > { %1624 = vmatpush3.bf16.msra.mxu0 (!%p343_p9), %v2064_v1  ;;  %v2094_v6 = vld [vmem:[%s2510_s1 + $0x58] sm:$0xff] (!%p343_p9)   ;;  %v2106_v8 = vld [vmem:[%s2510_s1 + $0x60] sm:$0xff] (!%p343_p9)   ;;  %v2123_v10 = vld [vmem:[%s2510_s1 + $0x68] sm:$0xff] (!%p343_p9)   ;;  %1729 = vmatprep.mubr.msk.bf16.mxu1 (!%p343_p9), %vm1942_vm0, %v1941_v20  ;;  %v1943_v22 = vmov (!%p343_p9), 0   ;;  %vm619_vm1 = vcmask (!%p343_p9), 1041408   ;;  %vm615_vm2 = vcmask (!%p343_p9), 31744  }
  0x12   : > { %1625 = vmatprep.subr.bf16.mxu0 (!%p343_p9), %v2070_v2  ;;  %v2100_v7 = vld [vmem:[%s2510_s1 + $0x18] sm:$0xff] (!%p343_p9)   ;;  %v2117_v9 = vld [vmem:[%s2510_s1 + $0x20] sm:$0xff] (!%p343_p9)   ;;  %v2131_v12 = vld [vmem:[%s2510_s1 + $0x28] sm:$0xff] (!%p343_p9)   ;;  %1819 = vset.pattern.permute.xlu0 (!%p343_p9), %v1943_v22  ;;  %vm678_vm3 = vcmask (!%p343_p9), 1043456   ;;  %vm674_vm4 = vcmask (!%p343_p9), 64512   ;;  %vm738_vm5 = vcmask (!%p343_p9), 130048  }
  0x13   : > { %v2138_v14 = vld [vmem:[%s2510_s1 + $0x70] sm:$0xff] (!%p343_p9)   ;;  %v2153_v17 = vld [vmem:[%s2510_s1 + $0x78] sm:$0xff] (!%p343_p9)   ;;  %v461_v21 = vld [vmem:[%s2513_s4] sm:$0xff] (!%p343_p9)  ;;  %1820 = vset.pattern.permute.xlu1 (!%p343_p9), %v1943_v22  ;;  %s380_s22 = sand.u32 (!%p343_p9), 1, %s1931_s18   ;;  %s1944_s15 = smov (!%p343_p9), [#allocation2]  }
  0x14   : > { %v2147_v16 = vld [vmem:[%s2510_s1 + $0x30] sm:$0xff] (!%p343_p9)   ;;  %v2160_v18 = vld [vmem:[%s2510_s1 + $0x38] sm:$0xff] (!%p343_p9)   ;;  %612 = vperm.xlu0 (!%p343_p9), %1819, %v461_v21   ;;  %v463_v23 = vld [vmem:[%s2515_s6] sm:$0xf] (!%p343_p9)  ;;  %s1560_s24 = sshll.u32 (!%p343_p9), %s380_s22, 4 }
  0x15   : > { %1626 = vmatpush3.bf16.msra.mxu0 (!%p343_p9), %v2076_v3  ;;  %v2188_v32 = vld [vmem:[%s2512_s3] sm:$0xf] (!%p343_p9)  ;;  %v2210_v47 = vld [vmem:[%s2518_s9 + $0x4] ss:$8 sps:$4 sm:$0xff] (!%p343_p9)   ;;  %v2250_v21 = vld [vmem:[%s2511_s2 + $0x50] sm:$0xff] (!%p343_p9)   ;;  %s2410_s25 = scalar_lea.vmem (!%p343_p9), [#allocation2], %s1560_s24 }
  0x16   : > { %1627 = vmatprep.subr.bf16.mxu0 (!%p343_p9), %v2082_v4  ;;  %v2202_v46 = vld [vmem:[%s2514_s5] sm:$0x3] (!%p343_p9)  ;;  %v2236_v63 = vld [vmem:[%s2511_s2 + $0x48] sm:$0xff] (!%p343_p9)   ;;  %s1881_s24 = sshll.u32 (!%p343_p9), %s1944_s15, 4  ;;  %s1882_s24 = int_to_ptr.vmem [resolvable:$false] %s1881_s24 }
  0x17   : > { %s2530_s12 = smov (!%p384_p10, %s1561_s12), 3  ;;  %v2215_v48 = vld [vmem:[%s2518_s9] ss:$8 sps:$4 sm:$0xff]  }
  0x18   : > { %s1620_s16 = sshll.u32 %s2530_s12, 3  ;;  %671 = vperm.xlu0 %1819, %v463_v23   ;;  %v2222_v49 = vld [vmem:[%s2511_s2 + $0x40] sm:$0xff]   ;;  %v2256_v23 = vld [vmem:[%s2511_s2 + $0x10] sm:$0xff]  }
  0x19   : > { %1628 = vmatpush3.bf16.msra.mxu0 %v2088_v5  ;;  %s2111_s14 = scalar_lea.vmem %s2524_s0, %s1620_s16  ;;  %v2231_v61 = vld [vmem:[%s2511_s2] sm:$0xff]   ;;  %s1494_s16 = sshll.u32 %s2410_s25, 4  ;;  %s2458_s16 = int_to_ptr.vmem [resolvable:$true] %s1494_s16 }
  0x1a   : > { %1629 = vmatprep.subr.bf16.mxu0 %v2094_v6  ;;  %v2126_v11 = vld [vmem:[%s2111_s14] sm:$0xff]  ;;  %s1877_s12 = scalar_lea.vmem %s2458_s16, 256  ;;  %s1883_s0 = scalar_lea.vmem %s1882_s24, 512 }
  0x1b   : > { %v468_v13 = vcombine.high %v2126_v11, %v2126_v11  ;;  %v2166_v19 = vpack.c.bf16 %v2126_v11, %v2126_v11  ;;  %p1878_p11 = scmp.ne.s32.totalorder %s2458_s16, %s1877_s12  ;;  %p1884_p0 = scmp.lt.s32.totalorder %s2458_s16, %s1882_s24 }
  0x1c   : > { %p1885_p1 = scmp.lt.s32.totalorder %s1883_s0, %s1877_s12 }
  0x1d   : > { %1630 = vmatpush3.bf16.msra.mxu0 %v2100_v7  ;;  %v2141_v15 = vpack.c.bf16 %v468_v13, %v468_v13  ;;  %v2243_v13 = vld [vmem:[%s2511_s2 + $0x8] sm:$0xff]   ;;  %p1879_p12 = pnand %p1878_p11, %p2045_p5 }
  0x1e   : > { %1631 = vmatprep.subr.bf16.mxu0 %v2106_v8  ;;  %p1886_p2 = por %p1885_p1, %p1884_p0 }
  0x1f   : > { %600 = vmatprep.mubr.bf16.mxu0 %v2141_v15  ;;  %p1880_p13 = pneg %p1879_p12 }
  0x21   : > { %1632 = vmatpush3.bf16.msra.mxu0 %v2117_v9  ;;  %p1887_p3 = pnand %p1886_p2, %p1880_p13 }
  0x22   : > { %1633 = vmatprep.subr.bf16.mxu0 %v2123_v10 }
  0x25   : > { %1634 = vmatpush3.bf16.msra.mxu0 %v2131_v12 }
  0x26   : > { %1635 = vmatprep.subr.bf16.mxu0 %v2138_v14 }
  0x29   : > { %1636 = vmatpush3.bf16.msra.mxu0 %v2147_v16 }
  0x2a   : > { %1637 = vmatprep.subr.bf16.mxu0 %v2153_v17 }
  0x2d   : > { %1638 = vmatpush3.bf16.msra.mxu0 %v2160_v18 }
  0x2e   : > { %1739 = vmatprep.subr.bf16.mxu0 %v1941_v20 }
  0x30   : > { %601 = vmatmul.mubr.bf16.vlgmr.msra.gmra.mrb[0].mxu0 %v2166_v19 }
  0x31   : > { %1741 = vmatprep.mubr.msk.bf16.mxu0 %vm1942_vm0, %v1941_v20 }
  0x93   : > { %v2195_v33 = vpop.permute.xlu0 %612 }
  0x97   : > { %v2225_v50 = vpop.permute.xlu0 %671 }
 0x103   : > { %v1639_v24 = vpop.f32.mrb[0].mxu0 }
 0x104   : > { %v1640_v25 = vpop.f32.mrb[1].mxu0 }
 0x105   : > { %v1641_v26 = vadd.f32 %v1640_v25, %v1639_v24  ;;  %v1642_v27 = vpop.f32.mrb[2].mxu0  ;;  %v2268_v24 = vld [vmem:[%s2511_s2 + $0x18] sm:$0xff]   ;;  %v2274_v25 = vld [vmem:[%s2511_s2 + $0x60] sm:$0xff]  }
 0x106   : > { %v1643_v28 = vpop.f32.mrb[3].mxu0  ;;  %v2286_v27 = vld [vmem:[%s2511_s2 + $0x68] sm:$0xff]  }
 0x107   : > { %v608_v29 = vmul.f32 0.0625, %v1641_v26  ;;  %v2280_v26 = vld [vmem:[%s2511_s2 + $0x20] sm:$0xff]   ;;  %v2292_v28 = vld [vmem:[%s2511_s2 + $0x28] sm:$0xff]  }
 0x109   : > { %v609_v30 = vpack.c.bf16 %v608_v29, %v608_v29  ;;  %v2298_v29 = vld [vmem:[%s2511_s2 + $0x70] sm:$0xff]  }
 0x10b   : > { %v621_v31 = vsel %vm619_vm1, %v609_v30, 0  ;;  %v2304_v30 = vld [vmem:[%s2511_s2 + $0x30] sm:$0xff]  }
 0x10c   : > { %1728 = vmatpush3.bf16.msra.mxu1 %v621_v31  ;;  %v2310_v31 = vld [vmem:[%s2511_s2 + $0x78] sm:$0xff]  }
 0x10d   : > { %1733 = vmatprep.subr.bf16.mxu1 %v1941_v20 }
 0x10f   : > { %1730 = vmatmul.mubr.msk.bf16.vlgmr.msra.gmra.mrb[0].mxu1 %vm615_vm2, %v2188_v32 }
 0x110   : > { %1735 = vmatprep.mubr.msk.bf16.mxu1 %vm1942_vm0, %v1941_v20 }
 0x1e2   : > { %v657_v34 = vpop.f32.mrb[0].mxu1 }
 0x1e3   : > { %v658_v35 = vadd.f32 %v657_v34, %v2195_v33  ;;  %v1731_v36 = vpop.f32.mrb[1].mxu1  ;;  %v2316_v34 = vld [vmem:[%s2511_s2 + $0x38] sm:$0xff]  }
 0x1e4   : > { %v660_v37 = vpop.f32.mrb[2].mxu1 }
 0x1e5   : > { %v663_v38 = vadd.f32 3.0, %v658_v35  ;;  %v1732_v39 = vpop.f32.mrb[3].mxu1 }
 0x1e7   : > { %v664_v40 = vmax.f32 %v663_v38, 0.0 }
 0x1e9   : > { %v665_v41 = vmin.f32 %v664_v40, 6.0 }
 0x1eb   : > { %v666_v42 = vmul.f32 0.16666667, %v665_v41 }
 0x1ed   : > { %v667_v43 = vmul.f32 %v666_v42, %v658_v35 }
 0x1ef   : > { %v668_v44 = vpack.c.bf16 %v667_v43, %v667_v43 }
 0x1f1   : > { %v680_v45 = vsel %vm678_vm3, %v668_v44, 0 }
 0x1f2   : > { %1734 = vmatpush3.bf16.msra.mxu1 %v680_v45 }
 0x1f3   : > { %742 = vmatprep.subr.bf16.mxu1 %v2210_v47 }
 0x1f5   : > { %1736 = vmatmul.mubr.msk.bf16.vlgmr.msra.gmra.mrb[4].mxu1 %vm674_vm4, %v2202_v46 }
 0x1f6   : > { %774 = vmatprep.mubr.bf16.mxu1 %v1943_v22  ;;  %743 = vmatpush1.bf16.msra.mxu1 %v2215_v48 }
 0x1f7   : > { %1649 = vmatprep.subr.bf16.mxu1 %v2222_v49 }
 0x2c8   : > { %v716_v51 = vpop.f32.mrb[4].mxu1 }
 0x2c9   : > { %v717_v52 = vadd.f32 %v716_v51, %v2225_v50  ;;  %v1737_v53 = vpop.f32.mrb[5].mxu1 }
 0x2ca   : > { %v719_v54 = vpop.f32.mrb[6].mxu1  ;;  %v2373_v53 = vld [vmem:[%s2516_s7] sm:$0x3] }
 0x2cb   : > { %v722_v55 = vsub.f32 0.0, %v717_v52  ;;  %v1738_v56 = vpop.f32.mrb[7].mxu1 }
 0x2cc   : > { %v2381_v56 = vld [vmem:[%s2519_s10 + $0x4] ss:$8 sps:$4 sm:$0xff]  }
 0x2cd   : > { %v723_v57 = vmul.f32 1.442695, %v722_v55 }
 0x2cf   : > { %1861 = vpow2.f32 %v723_v57 }
 0x2d9   : > { %v1862_v58 = vpop.eup %1861 }
 0x2da   : > { %v725_v59 = vadd.f32 1.0, %v1862_v58  ;;  %v2386_v58 = vld [vmem:[%s2519_s10] ss:$8 sps:$4 sm:$0xff]  }
 0x2dc   : > { %1863 = vrcp.f32 %v725_v59 }
 0x2e6   : > { %v1864_v60 = vpop.eup %1863 }
 0x2e7   : > { %v727_v62 = vpack.c.bf16 %v1864_v60, %v1864_v60 }
 0x2e9   : > { %1584 = vmatmul.mubr.msk.bf16.vlgmr.msra.gmra.mrb[8].mxu1 %vm738_vm5, %v727_v62 }
 0x2ea   : > { %1650 = vmatpush3.bf16.msra.mxu1 %v2231_v61  ;;  %911 = vmatprep.mubr.bf16.mxu1 %v2141_v15  ;;  %v2262_v15 = vld [vmem:[%s2511_s2 + $0x58] sm:$0xff]  }
 0x2eb   : > { %1651 = vmatprep.subr.bf16.mxu1 %v2236_v63 }
 0x2ee   : > { %1652 = vmatpush3.bf16.msra.mxu1 %v2243_v13 }
 0x2ef   : > { %1653 = vmatprep.subr.bf16.mxu1 %v2250_v21 }
 0x2f2   : > { %1654 = vmatpush3.bf16.msra.mxu1 %v2256_v23 }
 0x2f3   : > { %1655 = vmatprep.subr.bf16.mxu1 %v2262_v15 }
 0x2f6   : > { %1656 = vmatpush3.bf16.msra.mxu1 %v2268_v24 }
 0x2f7   : > { %1657 = vmatprep.subr.bf16.mxu1 %v2274_v25 }
 0x2fa   : > { %1658 = vmatpush3.bf16.msra.mxu1 %v2280_v26 }
 0x2fb   : > { %1659 = vmatprep.subr.bf16.mxu1 %v2286_v27 }
 0x2fe   : > { %1660 = vmatpush3.bf16.msra.mxu1 %v2292_v28 }
 0x2ff   : > { %1661 = vmatprep.subr.bf16.mxu1 %v2298_v29 }
 0x302   : > { %1662 = vmatpush3.bf16.msra.mxu1 %v2304_v30 }
 0x303   : > { %1663 = vmatprep.subr.bf16.mxu1 %v2310_v31 }
 0x306   : > { %1664 = vmatpush3.bf16.msra.mxu1 %v2316_v34 }
 0x307   : > { %1675 = vmatprep.subr.bf16.mxu1 %v2058_v0 }
 0x309   : > { %912 = vmatmul.mubr.bf16.vlgmr.msra.gmra.mrb[12].mxu1 %v2166_v19 }
 0x30a   : > { %1676 = vmatpush3.bf16.msra.mxu1 %v2064_v1 }
 0x30b   : > { %1677 = vmatprep.subr.bf16.mxu1 %v2070_v2 }
 0x30e   : > { %1678 = vmatpush3.bf16.msra.mxu1 %v2076_v3 }
 0x30f   : > { %1679 = vmatprep.subr.bf16.mxu1 %v2082_v4 }
 0x312   : > { %1680 = vmatpush3.bf16.msra.mxu1 %v2088_v5 }
 0x313   : > { %1681 = vmatprep.subr.bf16.mxu1 %v2094_v6 }
 0x316   : > { %1682 = vmatpush3.bf16.msra.mxu1 %v2100_v7 }
 0x317   : > { %1683 = vmatprep.subr.bf16.mxu1 %v2106_v8 }
 0x31a   : > { %1684 = vmatpush3.bf16.msra.mxu1 %v2117_v9 }
 0x31b   : > { %1685 = vmatprep.subr.bf16.mxu1 %v2123_v10 }
 0x31e   : > { %1686 = vmatpush3.bf16.msra.mxu1 %v2131_v12 }
 0x31f   : > { %1687 = vmatprep.subr.bf16.mxu1 %v2138_v14 }
 0x322   : > { %1688 = vmatpush3.bf16.msra.mxu1 %v2147_v16  ;;  %v2351_v16 = vld [vmem:[%s2111_s14 + $0x8] sm:$0xff]  ;;  %s1622_s14 = sshll.u32 %s2028_s21, 8  ;;  %s2468_s21 = scalar_lea.sflag [#allocation3], %s380_s22 }
 0x323   : > { %1689 = vmatprep.subr.bf16.mxu1 %v2153_v17  ;;  %v1095_v17 = vcombine.high %v2351_v16, %v2351_v16  ;;  %v2360_v19 = vpack.c.bf16 %v2351_v16, %v2351_v16  ;;  %s2463_s13 = scalar_lea.hbm %s2520_s11, %s1622_s14 }
 0x325   : > { %v2362_v35 = vpack.c.bf16 %v1095_v17, %v1095_v17 }
 0x326   : > { %1690 = vmatpush3.bf16.msra.mxu1 %v2160_v18  ;;  %v465_v18 = vld [vmem:[%s2517_s8] sm:$0xf] }
 0x327   : > { %1763 = vmatprep.subr.bf16.mxu1 %v1941_v20  ;;  %972 = vperm.xlu1 %1820, %v465_v18  }
 0x328   : > { %1131 = vmatprep.mubr.bf16.mxu1 %v2362_v35 }
 0x329   : > { %1132 = vmatmul.mubr.bf16.vlgmr.msra.gmra.mrb[16].mxu1 %v2360_v19 }
 0x32a   : > { %1765 = vmatprep.mubr.msk.bf16.mxu1 %vm1942_vm0, %v1941_v20 }
 0x3a6   : > { %v2391_v62 = vpop.permute.xlu1 %972 }
 0x3bc   : > { %v2338_v0 = vpop.f32.mrb[8].mxu1 }
 0x3bd   : > { %v2340_v1 = vpop.f32.mrb[9].mxu1 }
 0x3be   : > { %v1083_v2 = vcombine.low %v2338_v0, %v2340_v1  ;;  %v780_v3 = vpop.f32.mrb[10].mxu1 }
 0x3bf   : > { %v781_v4 = vpop.f32.mrb[11].mxu1 }
 0x3dc   : > { %v1665_v5 = vpop.f32.mrb[12].mxu1 }
 0x3dd   : > { %v1666_v6 = vpop.f32.mrb[13].mxu1 }
 0x3de   : > { %v1667_v7 = vadd.f32 %v1666_v6, %v1665_v5  ;;  %v1668_v8 = vpop.f32.mrb[14].mxu1 }
 0x3df   : > { %v1669_v9 = vpop.f32.mrb[15].mxu1 }
 0x3e0   : > { %v919_v10 = vmul.f32 0.0625, %v1667_v7 }
 0x3e2   : > { %v920_v12 = vpack.c.bf16 %v919_v10, %v919_v10 }
 0x3e4   : > { %v922_v14 = vsel %vm619_vm1, %v920_v12, 0 }
 0x3e5   : > { %1740 = vmatpush3.bf16.msra.mxu0 %v922_v14 }
 0x3e6   : > { %1745 = vmatprep.subr.bf16.mxu0 %v1941_v20 }
 0x3e8   : > { %1742 = vmatmul.mubr.msk.bf16.vlgmr.msra.gmra.mrb[4].mxu0 %vm615_vm2, %v2188_v32 }
 0x3e9   : > { %1747 = vmatprep.mubr.msk.bf16.mxu0 %vm1942_vm0, %v1941_v20 }
 0x3fc   : > { %v1691_v54 = vpop.f32.mrb[16].mxu1 }
 0x3fd   : > { %v1692_v55 = vpop.f32.mrb[17].mxu1 }
 0x3fe   : > { %v1694_v57 = vpop.f32.mrb[18].mxu1  ;;  %v1693_v60 = vadd.f32 %v1692_v55, %v1691_v54 }
 0x3ff   : > { %v1695_v59 = vpop.f32.mrb[19].mxu1 }
 0x400   : > { %v1139_v14 = vmul.f32 0.0625, %v1693_v60 }
 0x402   : > { %v1140_v17 = vpack.c.bf16 %v1139_v14, %v1139_v14 }
 0x4bb   : > { %v958_v36 = vpop.f32.mrb[4].mxu0 }
 0x4bc   : > { %v959_v37 = vadd.f32 %v958_v36, %v2195_v33  ;;  %v1743_v38 = vpop.f32.mrb[5].mxu0 }
 0x4bd   : > { %v961_v39 = vpop.f32.mrb[6].mxu0 }
 0x4be   : > { %v964_v40 = vadd.f32 3.0, %v959_v37  ;;  %v1744_v41 = vpop.f32.mrb[7].mxu0 }
 0x4c0   : > { %v965_v42 = vmax.f32 %v964_v40, 0.0  ;;  %v1085_v40 = vmul.f32 %v1083_v2, %v2126_v11 }
 0x4c2   : > { %v966_v43 = vmin.f32 %v965_v42, 6.0 }
 0x4c4   : > { %v967_v44 = vmul.f32 0.16666667, %v966_v43 }
 0x4c6   : > { %v968_v45 = vmul.f32 %v967_v44, %v959_v37  ;;  %v1142_v37 = vsel %vm619_vm1, %v1140_v17, 0 }
 0x4c8   : > { %v969_v51 = vpack.c.bf16 %v968_v45, %v968_v45 }
 0x4ca   : > { %v979_v52 = vsel %vm678_vm3, %v969_v51, 0 }
 0x4cb   : > { %1746 = vmatpush3.bf16.msra.mxu0 %v979_v52 }
 0x4cc   : > { %1040 = vmatprep.subr.bf16.mxu0 %v2381_v56 }
 0x4ce   : > { %1748 = vmatmul.mubr.msk.bf16.vlgmr.msra.gmra.mrb[8].mxu0 %vm674_vm4, %v2373_v53 }
 0x4cf   : > { %1072 = vmatprep.mubr.bf16.mxu0 %v1943_v22  ;;  %1041 = vmatpush1.bf16.msra.mxu0 %v2386_v58 }
 0x4d0   : > { %1751 = vmatprep.subr.bf16.mxu0 %v1941_v20 }
 0x5a1   : > { %v1015_v3 = vpop.f32.mrb[8].mxu0 }
 0x5a2   : > { %v1016_v4 = vadd.f32 %v1015_v3, %v2391_v62  ;;  %v1749_v5 = vpop.f32.mrb[9].mxu0 }
 0x5a3   : > { %v1018_v6 = vpop.f32.mrb[10].mxu0 }
 0x5a4   : > { %v1021_v7 = vsub.f32 0.0, %v1016_v4  ;;  %v1750_v8 = vpop.f32.mrb[11].mxu0 }
 0x5a6   : > { %v1022_v9 = vmul.f32 1.442695, %v1021_v7 }
 0x5a8   : > { %1865 = vpow2.f32 %v1022_v9 }
 0x5b2   : > { %v1866_v10 = vpop.eup %1865 }
 0x5b3   : > { %v1024_v12 = vadd.f32 1.0, %v1866_v10 }
 0x5b5   : > { %1867 = vrcp.f32 %v1024_v12 }
 0x5bf   : > { %v1868_v18 = vpop.eup %1867 }
 0x5c0   : > { %v1026_v36 = vpack.c.bf16 %v1868_v18, %v1868_v18 }
 0x5c2   : > { %1605 = vmatmul.mubr.msk.bf16.vlgmr.msra.gmra.mrb[12].mxu0 %vm738_vm5, %v1026_v36 }
 0x5c3   : > { %1752 = vmatpush3.bf16.msra.mxu0 %v1142_v37  ;;  %1753 = vmatprep.mubr.msk.bf16.mxu0 %vm1942_vm0, %v1941_v20 }
 0x5c4   : > { %1757 = vmatprep.subr.bf16.mxu0 %v1941_v20 }
 0x5ca   : > { %1754 = vmatmul.mubr.msk.bf16.vlgmr.msra.gmra.mrb[16].mxu0 %vm615_vm2, %v2188_v32 }
 0x5cb   : > { %1759 = vmatprep.mubr.msk.bf16.mxu0 %vm1942_vm0, %v1941_v20 }
 0x695   : > { %v1074_v38 = vpop.f32.mrb[12].mxu0 }
 0x696   : > { %v1076_v39 = vpop.f32.mrb[13].mxu0 }
 0x697   : > { %v1088_v41 = vcombine.low %v1074_v38, %v1076_v39  ;;  %v1078_v42 = vpop.f32.mrb[14].mxu0 }
 0x698   : > { %v1079_v43 = vpop.f32.mrb[15].mxu0 }
 0x699   : > { %v1090_v44 = vmul.f32 %v1088_v41, %v1085_v40 }
 0x69b   : > { %1091 = vst [vmem:[%s2410_s25] sm:$0xff] %v1090_v44 }
 0x69d   : > { %v1178_v45 = vpop.f32.mrb[16].mxu0 }
 0x69e   : > { %v1179_v51 = vadd.f32 %v1178_v45, %v2195_v33  ;;  %v1755_v52 = vpop.f32.mrb[17].mxu0 }
 0x69f   : > { %v1181_v54 = vpop.f32.mrb[18].mxu0 }
 0x6a0   : > { %v1184_v55 = vadd.f32 3.0, %v1179_v51  ;;  %v1756_v57 = vpop.f32.mrb[19].mxu0 }
 0x6a2   : > { %v1185_v59 = vmax.f32 %v1184_v55, 0.0 }
 0x6a4   : > { %v1186_v60 = vmin.f32 %v1185_v59, 6.0 }
 0x6a6   : > { %v1187_v3 = vmul.f32 0.16666667, %v1186_v60 }
 0x6a8   : > { %v1188_v0 = vmul.f32 %v1187_v3, %v1179_v51 }
 0x6aa   : > { %v1189_v11 = vpack.c.bf16 %v1188_v0, %v1188_v0 }
 0x6ac   : > { %v1191_v1 = vsel %vm678_vm3, %v1189_v11, 0 }
 0x6ad   : > { %1758 = vmatpush3.bf16.msra.mxu0 %v1191_v1 }
 0x6ae   : > { %1242 = vmatprep.subr.bf16.mxu0 %v2210_v47 }
 0x6b0   : > { %1760 = vmatmul.mubr.msk.bf16.vlgmr.msra.gmra.mrb[20].mxu0 %vm674_vm4, %v2202_v46 }
 0x6b1   : > { %1243 = vmatpush1.bf16.msra.mxu0 %v2215_v48  ;;  %1274 = vmatprep.mubr.bf16.mxu0 %v1943_v22 }
 0x6b2   : > { %1701 = vmatprep.subr.bf16.mxu0 %v2222_v49 }
 0x783   : > { %v1227_v2 = vpop.f32.mrb[20].mxu0 }
 0x784   : > { %v1228_v4 = vadd.f32 %v1227_v2, %v2225_v50  ;;  %v1761_v5 = vpop.f32.mrb[21].mxu0 }
 0x785   : > { %v1230_v6 = vpop.f32.mrb[22].mxu0 }
 0x786   : > { %v1233_v7 = vsub.f32 0.0, %v1228_v4  ;;  %v1762_v8 = vpop.f32.mrb[23].mxu0 }
 0x788   : > { %v1234_v9 = vmul.f32 1.442695, %v1233_v7 }
 0x78a   : > { %1869 = vpow2.f32 %v1234_v9 }
 0x794   : > { %v1870_v10 = vpop.eup %1869 }
 0x795   : > { %v1236_v47 = vadd.f32 1.0, %v1870_v10 }
 0x797   : > { %1871 = vrcp.f32 %v1236_v47 }
 0x7a1   : > { %v1872_v12 = vpop.eup %1871 }
 0x7a2   : > { %v1238_v46 = vpack.c.bf16 %v1872_v12, %v1872_v12 }
 0x7a4   : > { %1609 = vmatmul.mubr.msk.bf16.vlgmr.msra.gmra.mrb[24].mxu0 %vm738_vm5, %v1238_v46 }
 0x7a5   : > { %1702 = vmatpush3.bf16.msra.mxu0 %v2231_v61  ;;  %1315 = vmatprep.mubr.bf16.mxu0 %v2362_v35 }
 0x7a6   : > { %1703 = vmatprep.subr.bf16.mxu0 %v2236_v63 }
 0x7a9   : > { %1704 = vmatpush3.bf16.msra.mxu0 %v2243_v13 }
 0x7aa   : > { %1705 = vmatprep.subr.bf16.mxu0 %v2250_v21 }
 0x7ad   : > { %1706 = vmatpush3.bf16.msra.mxu0 %v2256_v23 }
 0x7ae   : > { %1707 = vmatprep.subr.bf16.mxu0 %v2262_v15 }
 0x7b1   : > { %1708 = vmatpush3.bf16.msra.mxu0 %v2268_v24 }
 0x7b2   : > { %1709 = vmatprep.subr.bf16.mxu0 %v2274_v25 }
 0x7b5   : > { %1710 = vmatpush3.bf16.msra.mxu0 %v2280_v26 }
 0x7b6   : > { %1711 = vmatprep.subr.bf16.mxu0 %v2286_v27 }
 0x7b9   : > { %1712 = vmatpush3.bf16.msra.mxu0 %v2292_v28 }
 0x7ba   : > { %1713 = vmatprep.subr.bf16.mxu0 %v2298_v29 }
 0x7bd   : > { %1714 = vmatpush3.bf16.msra.mxu0 %v2304_v30 }
 0x7be   : > { %1715 = vmatprep.subr.bf16.mxu0 %v2310_v31 }
 0x7c1   : > { %1716 = vmatpush3.bf16.msra.mxu0 %v2316_v34 }
 0x7c4   : > { %1316 = vmatmul.mubr.bf16.vlgmr.msra.gmra.mrb[28].mxu0 %v2360_v19 }
 0x877   : > { %v1276_v48 = vpop.f32.mrb[24].mxu0 }
 0x878   : > { %v1278_v49 = vpop.f32.mrb[25].mxu0 }
 0x879   : > { %v1469_v50 = vcombine.low %v1276_v48, %v1278_v49  ;;  %v1280_v61 = vpop.f32.mrb[26].mxu0 }
 0x87a   : > { %v1281_v63 = vpop.f32.mrb[27].mxu0 }
 0x87b   : > { %v1471_v43 = vmul.f32 %v2351_v16, %v1469_v50 }
 0x897   : > { %v1717_v13 = vpop.f32.mrb[28].mxu0 }
 0x898   : > { %v1718_v21 = vpop.f32.mrb[29].mxu0 }
 0x899   : > { %v1719_v23 = vadd.f32 %v1718_v21, %v1717_v13  ;;  %v1720_v15 = vpop.f32.mrb[30].mxu0 }
 0x89a   : > { %v1721_v24 = vpop.f32.mrb[31].mxu0 }
 0x89b   : > { %v1323_v25 = vmul.f32 0.0625, %v1719_v23 }
 0x89d   : > { %v1324_v26 = vpack.c.bf16 %v1323_v25, %v1323_v25 }
 0x89f   : > { %v1326_v27 = vsel %vm619_vm1, %v1324_v26, 0 }
 0x8a0   : > { %1764 = vmatpush3.bf16.msra.mxu1 %v1326_v27 }
 0x8a1   : > { %1769 = vmatprep.subr.bf16.mxu1 %v1941_v20 }
 0x8a3   : > { %1766 = vmatmul.mubr.msk.bf16.vlgmr.msra.gmra.mrb[20].mxu1 %vm615_vm2, %v2188_v32 }
 0x8a4   : > { %1771 = vmatprep.mubr.msk.bf16.mxu1 %vm1942_vm0, %v1941_v20 }
 0x976   : > { %v1362_v28 = vpop.f32.mrb[20].mxu1 }
 0x977   : > { %v1363_v29 = vadd.f32 %v1362_v28, %v2195_v33  ;;  %v1767_v30 = vpop.f32.mrb[21].mxu1 }
 0x978   : > { %v1365_v31 = vpop.f32.mrb[22].mxu1 }
 0x979   : > { %v1368_v34 = vadd.f32 3.0, %v1363_v29  ;;  %v1768_v19 = vpop.f32.mrb[23].mxu1 }
 0x97b   : > { %v1369_v35 = vmax.f32 %v1368_v34, 0.0 }
 0x97d   : > { %v1370_v14 = vmin.f32 %v1369_v35, 6.0 }
 0x97f   : > { %v1371_v17 = vmul.f32 0.16666667, %v1370_v14 }
 0x981   : > { %v1372_v18 = vmul.f32 %v1371_v17, %v1363_v29 }
 0x983   : > { %v1373_v36 = vpack.c.bf16 %v1372_v18, %v1372_v18 }
 0x985   : > { %v1375_v37 = vsel %vm678_vm3, %v1373_v36, 0 }
 0x986   : > { %1770 = vmatpush3.bf16.msra.mxu1 %v1375_v37 }
 0x987   : > { %1426 = vmatprep.subr.bf16.mxu1 %v2381_v56 }
 0x989   : > { %1772 = vmatmul.mubr.msk.bf16.vlgmr.msra.gmra.mrb[24].mxu1 %vm674_vm4, %v2373_v53 }
 0x98a   : > { %1427 = vmatpush1.bf16.msra.mxu1 %v2386_v58  ;;  %1458 = vmatprep.mubr.bf16.mxu1 %v1943_v22 }
 0xa5c   : > { %v1411_v20 = vpop.f32.mrb[24].mxu1 }
 0xa5d   : > { %v1412_v32 = vadd.f32 %v1411_v20, %v2391_v62  ;;  %v1773_v33 = vpop.f32.mrb[25].mxu1 }
 0xa5e   : > { %v1414_v38 = vpop.f32.mrb[26].mxu1 }
 0xa5f   : > { %v1417_v39 = vsub.f32 0.0, %v1412_v32  ;;  %v1774_v40 = vpop.f32.mrb[27].mxu1 }
 0xa61   : > { %v1418_v41 = vmul.f32 1.442695, %v1417_v39 }
 0xa63   : > { %1873 = vpow2.f32 %v1418_v41 }
 0xa6d   : > { %v1874_v42 = vpop.eup %1873 }
 0xa6e   : > { %v1420_v56 = vadd.f32 1.0, %v1874_v42 }
 0xa70   : > { %1875 = vrcp.f32 %v1420_v56 }
 0xa7a   : > { %v1876_v53 = vpop.eup %1875 }
 0xa7b   : > { %v1422_v58 = vpack.c.bf16 %v1876_v53, %v1876_v53 }
 0xa7d   : > { %1612 = vmatmul.mubr.msk.bf16.vlgmr.msra.gmra.mrb[28].mxu1 %vm738_vm5, %v1422_v58 }
 0xb50   : > { %v1460_v22 = vpop.f32.mrb[28].mxu1 }
 0xb51   : > { %v1462_v62 = vpop.f32.mrb[29].mxu1 }
 0xb52   : > { %v1474_v44 = vcombine.low %v1460_v22, %v1462_v62  ;;  %v1464_v45 = vpop.f32.mrb[30].mxu1 }
 0xb53   : > { %v1465_v51 = vpop.f32.mrb[31].mxu1 }
 0xb54   : > { %v1476_v52 = vmul.f32 %v1474_v44, %v1471_v43 }
 0xb56   : > { %1613 = vst [vmem:[%s2410_s25 + $0x8] sm:$0xff] %v1476_v52 }
 0xb57   : > { %1890 = shalt.err (!%p1887_p3)
}
 0xb58   : > { %s1891_s22 = scalar_lea.hbm %s2463_s13, 256  ;;  %s1895_s29 = scalar_lea.hbm %s2520_s11, 512 }
 0xb59   : > { %p1892_p4 = scmp.ne.s32.totalorder %s2463_s13, %s1891_s22  ;;  %p1896_p9 = scmp.lt.u32.totalorder %s2463_s13, %s2520_s11 }
 0xb5a   : > { %p1897_p10 = scmp.lt.u32.totalorder %s1895_s29, %s1891_s22  ;;  %p1899_p12 = scmp.lt.u32.totalorder %s1891_s22, %s2463_s13 }
 0xb5b   : > { %p1893_p7 = pnand %p1892_p4, %p2045_p5 }
 0xb5c   : > { %p1898_p11 = por %p1897_p10, %p1896_p9 }
 0xb5d   : > { %p1894_p8 = pneg %p1893_p7 }
 0xb5e   : > { %p1900_p13 = por %p1899_p12, %p1898_p11 }
 0xb60   : > { %p1901_p0 = pnand %p1900_p13, %p1894_p8 }
 0xb62   : > { %1904 = shalt.err (!%p1901_p0)
}
 0xb63   : > { %s1945_s0 = smov 128   ;;  %s1946_s12 = smov 8  }
 0xb64   : > { %1775 = dma.vmem_to_hbm [thread:$0]  (%p2045_p5), %s2458_s16, 256, %s2463_s13, %s2468_s21, %s1945_s0, %s1945_s0, %s1946_s12  }
 0xb65 PF: > { %p1781_p1 = scmp.ge.s32.totalorder %s1939_s20, 2  ;;  %s1509_s24 = sand.u32 1, %s1927_s17  }
 0xb66   : > { %s1510_s22 = scalar_lea.sflag [#allocation3], %s1509_s24 }
 0xb67   : > { %p1778_p2 = pnand %p1781_p1, %p2049_p6 }
 0xb69   : > { %1922 = dma.done.wait (!%p1778_p2), %s1510_s22, 256  }
 0xb6a   : > { %1924 = vsyncadd (!%p1778_p2), %s1510_s22, 4294967040  ;;  %p21_p3 = scmp.ge.s32.totalorder %s2032_s23, 4   ;;  %s2525_s17 = smov %s1931_s18 }
 0xb6b   : > { %s2526_s18 = smov %s1935_s19  ;;  %s2527_s19 = smov %s2043_s26 }
 0xb6c   : > { %s2528_s20 = smov %s2032_s23  ;;  %23 = sbr.rel (!%p21_p3) target bundleno = 5 (0x5), region = 101 }
 0xb73   :  { %1515 = vsyncpa [#allocation3], 1 }
 0xb74   :  { %1517 = vsyncpa [#allocation3 + $0x1], 1 }

// kernel: tpu_custom_call.1
= control target key start
LH: loop header
LB: loop body
LE: loop exit
PB: predicated region body
PF: predicated region fallthrough
CT: control target
= control target key end

     0   :  { %s2509_s0 = inlined_call_operand.vmem [shape: f32[4,4,256], index: 0, kind: input, shape index: {}]   ;;  %s2510_s1 = inlined_call_operand.vmem [shape: bf16[256,16], index: 1, kind: input, shape index: {}]   ;;  %s2511_s2 = inlined_call_operand.vmem [shape: bf16[256,16], index: 2, kind: input, shape index: {}]   ;;  %s2512_s3 = inlined_call_operand.vmem [shape: bf16[8,4], index: 3, kind: input, shape index: {}]   ;;  %s2513_s4 = inlined_call_operand.vmem [shape: f32[8,1], index: 4, kind: input, shape index: {}]   ;;  %s2514_s5 = inlined_call_operand.vmem [shape: bf16[4,8], index: 5, kind: input, shape index: {}]   ;;  %s2515_s6 = inlined_call_operand.vmem [shape: f32[4,1], index: 6, kind: input, shape index: {}]   ;;  %s2516_s7 = inlined_call_operand.vmem [shape: bf16[4,8], index: 7, kind: input, shape index: {}]   ;;  %s2517_s8 = inlined_call_operand.vmem [shape: f32[4,1], index: 8, kind: input, shape index: {}]   ;;  %s2518_s9 = inlined_call_operand.vmem [shape: bf16[16,256], index: 9, kind: input, shape index: {}]   ;;  %s2519_s10 = inlined_call_operand.vmem [shape: bf16[16,256], index: 10, kind: input, shape index: {}]   ;;  %s2520_s11 = inlined_call_operand.hbm [shape: f32[4,4,256], index: 11, kind: output, shape index: {}]  }
   0x1   :  { %2521 = sst [smem:[#allocation5_spill]] %s2509_s0 }
   0x2   :  { %16 = vsyncpa [#allocation3], 0 }
   0x3   :  { %18 = vsyncpa [#allocation3 + $0x1], 0  ;;  %s2007_s17 = smov 0   ;;  %s2009_s18 = smov 0  }
   0x4   :  { %s2011_s19 = smov 0   ;;  %s2013_s20 = smov 0  }
   0x5 LB: > { %s2028_s21 = sadd.s32 4294967295, %s1939_s20   ;;  %s1556_s22 = sadd.s32 4294967294, %s1939_s20   ;;  %s1939_s20 = sphi %s2013_s20, %s2528_s20   ;;  %s1935_s19 = sphi %s2011_s19, %s2527_s19   ;;  %s1931_s18 = sphi %s2009_s18, %s2526_s18   ;;  %s1927_s17 = sphi %s2007_s17, %s2525_s17  }
   0x6   : > { %s2032_s23 = sadd.s32 1, %s1939_s20   ;;  %s267_s24 = sadd.s32 1, %s1935_s19 }
   0x7   : > { %s264_s25 = ssub.s32 %s1939_s20, %s2032_s23  ;;  %p277_p0 = scmp.ne.s32.totalorder %s1935_s19, %s1931_s18 }
   0x8   : > { %p265_p1 = scmp.eq.s32.totalorder %s264_s25, 0  ;;  %p278_p2 = scmp.eq.s32.totalorder %s2028_s21, 1 }
   0x9   : > { %p283_p3 = scmp.ne.s32.totalorder %s1931_s18, %s1927_s17  ;;  %p284_p4 = scmp.eq.s32.totalorder %s1556_s22, 1 }
   0xa   : > { %s2043_s26 = scalar_select %p265_p1, %s1935_s19, %s267_s24  }
   0xb   : > { %p2045_p5 = por %p278_p2, %p277_p0  ;;  %p2049_p6 = por %p284_p4, %p283_p3 }
   0xc   : > { %p1559_p7 = scmp.ge.s32.totalorder %s1939_s20, 1  ;;  %p342_p8 = scmp.lt.s32.totalorder %s1939_s20, 3 }
   0xe   : > { %p343_p9 = pnand %p1559_p7, %p342_p8 }
   0xf   : > { %v2058_v0 = vld [vmem:[%s2510_s1 + $0x40] sm:$0xff] (!%p343_p9)   ;;  %s1561_s12 = sshll.u32 (!%p343_p9), %s2028_s21, 1  ;;  %v2070_v2 = vld [vmem:[%s2510_s1 + $0x48] sm:$0xff] (!%p343_p9)   ;;  %v2082_v4 = vld [vmem:[%s2510_s1 + $0x50] sm:$0xff] (!%p343_p9)   ;;  %s2524_s0 = sld [smem:[#allocation5_spill]] (!%p343_p9)  ;;  %v1941_v20 = vmov (!%p343_p9), 0.0  }
  0x10   : > { %346 = sbr.rel (%p343_p9) target bundleno = 2917 (0xb65), region = 64  ;;  %v2064_v1 = vld [vmem:[%s2510_s1] sm:$0xff] (!%p343_p9)   ;;  %1623 = vmatprep.subr.bf16.mxu0 (!%p343_p9), %v2058_v0  ;;  %p384_p10 = scmp.lt.s32.totalorder (!%p343_p9), %s1561_s12, 3  ;;  %v2076_v3 = vld [vmem:[%s2510_s1 + $0x8] sm:$0xff] (!%p343_p9)   ;;  %v2088_v5 = vld [vmem:[%s2510_s1 + $0x10] sm:$0xff] (!%p343_p9)   ;;  %1727 = vmatprep.subr.bf16.mxu1 (!%p343_p9), %v1941_v20  ;;  %vm1942_vm0 = vmmov (!%p343_p9), 0  }
  0x11   : > { %1624 = vmatpush3.bf16.msra.mxu0 (!%p343_p9), %v2064_v1  ;;  %v2094_v6 = vld [vmem:[%s2510_s1 + $0x58] sm:$0xff] (!%p343_p9)   ;;  %v2106_v8 = vld [vmem:[%s2510_s1 + $0x60] sm:$0xff] (!%p343_p9)   ;;  %v2123_v10 = vld [vmem:[%s2510_s1 + $0x68] sm:$0xff] (!%p343_p9)   ;;  %1729 = vmatprep.mubr.msk.bf16.mxu1 (!%p343_p9), %vm1942_vm0, %v1941_v20  ;;  %v1943_v22 = vmov (!%p343_p9), 0   ;;  %vm619_vm1 = vcmask (!%p343_p9), 1041408   ;;  %vm615_vm2 = vcmask (!%p343_p9), 31744  }
  0x12   : > { %1625 = vmatprep.subr.bf16.mxu0 (!%p343_p9), %v2070_v2  ;;  %v2100_v7 = vld [vmem:[%s2510_s1 + $0x18] sm:$0xff] (!%p343_p9)   ;;  %v2117_v9 = vld [vmem:[%s2510_s1 + $0x20] sm:$0xff] (!%p343_p9)   ;;  %v2131_v12 = vld [vmem:[%s2510_s1 + $0x28] sm:$0xff] (!%p343_p9)   ;;  %1819 = vset.pattern.permute.xlu0 (!%p343_p9), %v1943_v22  ;;  %vm678_vm3 = vcmask (!%p343_p9), 1043456   ;;  %vm674_vm4 = vcmask (!%p343_p9), 64512   ;;  %vm738_vm5 = vcmask (!%p343_p9), 130048  }
  0x13   : > { %v2138_v14 = vld [vmem:[%s2510_s1 + $0x70] sm:$0xff] (!%p343_p9)   ;;  %v2153_v17 = vld [vmem:[%s2510_s1 + $0x78] sm:$0xff] (!%p343_p9)   ;;  %v461_v21 = vld [vmem:[%s2513_s4] sm:$0xff] (!%p343_p9)  ;;  %1820 = vset.pattern.permute.xlu1 (!%p343_p9), %v1943_v22  ;;  %s380_s22 = sand.u32 (!%p343_p9), 1, %s1931_s18   ;;  %s1944_s15 = smov (!%p343_p9), [#allocation2]  }
  0x14   : > { %v2147_v16 = vld [vmem:[%s2510_s1 + $0x30] sm:$0xff] (!%p343_p9)   ;;  %v2160_v18 = vld [vmem:[%s2510_s1 + $0x38] sm:$0xff] (!%p343_p9)   ;;  %612 = vperm.xlu0 (!%p343_p9), %1819, %v461_v21   ;;  %v463_v23 = vld [vmem:[%s2515_s6] sm:$0xf] (!%p343_p9)  ;;  %s1560_s24 = sshll.u32 (!%p343_p9), %s380_s22, 4 }
  0x15   : > { %1626 = vmatpush3.bf16.msra.mxu0 (!%p343_p9), %v2076_v3  ;;  %v2188_v32 = vld [vmem:[%s2512_s3] sm:$0xf] (!%p343_p9)  ;;  %v2210_v47 = vld [vmem:[%s2518_s9 + $0x4] ss:$8 sps:$4 sm:$0xff] (!%p343_p9)   ;;  %v2250_v21 = vld [vmem:[%s2511_s2 + $0x50] sm:$0xff] (!%p343_p9)   ;;  %s2410_s25 = scalar_lea.vmem (!%p343_p9), [#allocation2], %s1560_s24 }
  0x16   : > { %1627 = vmatprep.subr.bf16.mxu0 (!%p343_p9), %v2082_v4  ;;  %v2202_v46 = vld [vmem:[%s2514_s5] sm:$0x3] (!%p343_p9)  ;;  %v2236_v63 = vld [vmem:[%s2511_s2 + $0x48] sm:$0xff] (!%p343_p9)   ;;  %s1881_s24 = sshll.u32 (!%p343_p9), %s1944_s15, 4  ;;  %s1882_s24 = int_to_ptr.vmem [resolvable:$false] %s1881_s24 }
  0x17   : > { %s2530_s12 = smov (!%p384_p10, %s1561_s12), 3  ;;  %v2215_v48 = vld [vmem:[%s2518_s9] ss:$8 sps:$4 sm:$0xff]  }
  0x18   : > { %s1620_s16 = sshll.u32 %s2530_s12, 3  ;;  %671 = vperm.xlu0 %1819, %v463_v23   ;;  %v2222_v49 = vld [vmem:[%s2511_s2 + $0x40] sm:$0xff]   ;;  %v2256_v23 = vld [vmem:[%s2511_s2 + $0x10] sm:$0xff]  }
  0x19   : > { %1628 = vmatpush3.bf16.msra.mxu0 %v2088_v5  ;;  %s2111_s14 = scalar_lea.vmem %s2524_s0, %s1620_s16  ;;  %v2231_v61 = vld [vmem:[%s2511_s2] sm:$0xff]   ;;  %s1494_s16 = sshll.u32 %s2410_s25, 4  ;;  %s2458_s16 = int_to_ptr.vmem [resolvable:$true] %s1494_s16 }
  0x1a   : > { %1629 = vmatprep.subr.bf16.mxu0 %v2094_v6  ;;  %v2126_v11 = vld [vmem:[%s2111_s14] sm:$0xff]  ;;  %s1877_s12 = scalar_lea.vmem %s2458_s16, 256  ;;  %s1883_s0 = scalar_lea.vmem %s1882_s24, 512 }
  0x1b   : > { %v468_v13 = vcombine.high %v2126_v11, %v2126_v11  ;;  %v2166_v19 = vpack.c.bf16 %v2126_v11, %v2126_v11  ;;  %p1878_p11 = scmp.ne.s32.totalorder %s2458_s16, %s1877_s12  ;;  %p1884_p0 = scmp.lt.s32.totalorder %s2458_s16, %s1882_s24 }
  0x1c   : > { %p1885_p1 = scmp.lt.s32.totalorder %s1883_s0, %s1877_s12 }
  0x1d   : > { %1630 = vmatpush3.bf16.msra.mxu0 %v2100_v7  ;;  %v2141_v15 = vpack.c.bf16 %v468_v13, %v468_v13  ;;  %v2243_v13 = vld [vmem:[%s2511_s2 + $0x8] sm:$0xff]   ;;  %p1879_p12 = pnand %p1878_p11, %p2045_p5 }
  0x1e   : > { %1631 = vmatprep.subr.bf16.mxu0 %v2106_v8  ;;  %p1886_p2 = por %p1885_p1, %p1884_p0 }
  0x1f   : > { %600 = vmatprep.mubr.bf16.mxu0 %v2141_v15  ;;  %p1880_p13 = pneg %p1879_p12 }
  0x21   : > { %1632 = vmatpush3.bf16.msra.mxu0 %v2117_v9  ;;  %p1887_p3 = pnand %p1886_p2, %p1880_p13 }
  0x22   : > { %1633 = vmatprep.subr.bf16.mxu0 %v2123_v10 }
  0x25   : > { %1634 = vmatpush3.bf16.msra.mxu0 %v2131_v12 }
  0x26   : > { %1635 = vmatprep.subr.bf16.mxu0 %v2138_v14 }
  0x29   : > { %1636 = vmatpush3.bf16.msra.mxu0 %v2147_v16 }
  0x2a   : > { %1637 = vmatprep.subr.bf16.mxu0 %v2153_v17 }
  0x2d   : > { %1638 = vmatpush3.bf16.msra.mxu0 %v2160_v18 }
  0x2e   : > { %1739 = vmatprep.subr.bf16.mxu0 %v1941_v20 }
  0x30   : > { %601 = vmatmul.mubr.bf16.vlgmr.msra.gmra.mrb[0].mxu0 %v2166_v19 }
  0x31   : > { %1741 = vmatprep.mubr.msk.bf16.mxu0 %vm1942_vm0, %v1941_v20 }
  0x93   : > { %v2195_v33 = vpop.permute.xlu0 %612 }
  0x97   : > { %v2225_v50 = vpop.permute.xlu0 %671 }
 0x103   : > { %v1639_v24 = vpop.f32.mrb[0].mxu0 }
 0x104   : > { %v1640_v25 = vpop.f32.mrb[1].mxu0 }
 0x105   : > { %v1641_v26 = vadd.f32 %v1640_v25, %v1639_v24  ;;  %v1642_v27 = vpop.f32.mrb[2].mxu0  ;;  %v2268_v24 = vld [vmem:[%s2511_s2 + $0x18] sm:$0xff]   ;;  %v2274_v25 = vld [vmem:[%s2511_s2 + $0x60] sm:$0xff]  }
 0x106   : > { %v1643_v28 = vpop.f32.mrb[3].mxu0  ;;  %v2286_v27 = vld [vmem:[%s2511_s2 + $0x68] sm:$0xff]  }
 0x107   : > { %v608_v29 = vmul.f32 0.0625, %v1641_v26  ;;  %v2280_v26 = vld [vmem:[%s2511_s2 + $0x20] sm:$0xff]   ;;  %v2292_v28 = vld [vmem:[%s2511_s2 + $0x28] sm:$0xff]  }
 0x109   : > { %v609_v30 = vpack.c.bf16 %v608_v29, %v608_v29  ;;  %v2298_v29 = vld [vmem:[%s2511_s2 + $0x70] sm:$0xff]  }
 0x10b   : > { %v621_v31 = vsel %vm619_vm1, %v609_v30, 0  ;;  %v2304_v30 = vld [vmem:[%s2511_s2 + $0x30] sm:$0xff]  }
 0x10c   : > { %1728 = vmatpush3.bf16.msra.mxu1 %v621_v31  ;;  %v2310_v31 = vld [vmem:[%s2511_s2 + $0x78] sm:$0xff]  }
 0x10d   : > { %1733 = vmatprep.subr.bf16.mxu1 %v1941_v20 }
 0x10f   : > { %1730 = vmatmul.mubr.msk.bf16.vlgmr.msra.gmra.mrb[0].mxu1 %vm615_vm2, %v2188_v32 }
 0x110   : > { %1735 = vmatprep.mubr.msk.bf16.mxu1 %vm1942_vm0, %v1941_v20 }
 0x1e2   : > { %v657_v34 = vpop.f32.mrb[0].mxu1 }
 0x1e3   : > { %v658_v35 = vadd.f32 %v657_v34, %v2195_v33  ;;  %v1731_v36 = vpop.f32.mrb[1].mxu1  ;;  %v2316_v34 = vld [vmem:[%s2511_s2 + $0x38] sm:$0xff]  }
 0x1e4   : > { %v660_v37 = vpop.f32.mrb[2].mxu1 }
 0x1e5   : > { %v663_v38 = vadd.f32 3.0, %v658_v35  ;;  %v1732_v39 = vpop.f32.mrb[3].mxu1 }
 0x1e7   : > { %v664_v40 = vmax.f32 %v663_v38, 0.0 }
 0x1e9   : > { %v665_v41 = vmin.f32 %v664_v40, 6.0 }
 0x1eb   : > { %v666_v42 = vmul.f32 0.16666667, %v665_v41 }
 0x1ed   : > { %v667_v43 = vmul.f32 %v666_v42, %v658_v35 }
 0x1ef   : > { %v668_v44 = vpack.c.bf16 %v667_v43, %v667_v43 }
 0x1f1   : > { %v680_v45 = vsel %vm678_vm3, %v668_v44, 0 }
 0x1f2   : > { %1734 = vmatpush3.bf16.msra.mxu1 %v680_v45 }
 0x1f3   : > { %742 = vmatprep.subr.bf16.mxu1 %v2210_v47 }
 0x1f5   : > { %1736 = vmatmul.mubr.msk.bf16.vlgmr.msra.gmra.mrb[4].mxu1 %vm674_vm4, %v2202_v46 }
 0x1f6   : > { %774 = vmatprep.mubr.bf16.mxu1 %v1943_v22  ;;  %743 = vmatpush1.bf16.msra.mxu1 %v2215_v48 }
 0x1f7   : > { %1649 = vmatprep.subr.bf16.mxu1 %v2222_v49 }
 0x2c8   : > { %v716_v51 = vpop.f32.mrb[4].mxu1 }
 0x2c9   : > { %v717_v52 = vadd.f32 %v716_v51, %v2225_v50  ;;  %v1737_v53 = vpop.f32.mrb[5].mxu1 }
 0x2ca   : > { %v719_v54 = vpop.f32.mrb[6].mxu1  ;;  %v2373_v53 = vld [vmem:[%s2516_s7] sm:$0x3] }
 0x2cb   : > { %v722_v55 = vsub.f32 0.0, %v717_v52  ;;  %v1738_v56 = vpop.f32.mrb[7].mxu1 }
 0x2cc   : > { %v2381_v56 = vld [vmem:[%s2519_s10 + $0x4] ss:$8 sps:$4 sm:$0xff]  }
 0x2cd   : > { %v723_v57 = vmul.f32 1.442695, %v722_v55 }
 0x2cf   : > { %1861 = vpow2.f32 %v723_v57 }
 0x2d9   : > { %v1862_v58 = vpop.eup %1861 }
 0x2da   : > { %v725_v59 = vadd.f32 1.0, %v1862_v58  ;;  %v2386_v58 = vld [vmem:[%s2519_s10] ss:$8 sps:$4 sm:$0xff]  }
 0x2dc   : > { %1863 = vrcp.f32 %v725_v59 }
 0x2e6   : > { %v1864_v60 = vpop.eup %1863 }
 0x2e7   : > { %v727_v62 = vpack.c.bf16 %v1864_v60, %v1864_v60 }
 0x2e9   : > { %1584 = vmatmul.mubr.msk.bf16.vlgmr.msra.gmra.mrb[8].mxu1 %vm738_vm5, %v727_v62 }
 0x2ea   : > { %1650 = vmatpush3.bf16.msra.mxu1 %v2231_v61  ;;  %911 = vmatprep.mubr.bf16.mxu1 %v2141_v15  ;;  %v2262_v15 = vld [vmem:[%s2511_s2 + $0x58] sm:$0xff]  }
 0x2eb   : > { %1651 = vmatprep.subr.bf16.mxu1 %v2236_v63 }
 0x2ee   : > { %1652 = vmatpush3.bf16.msra.mxu1 %v2243_v13 }
 0x2ef   : > { %1653 = vmatprep.subr.bf16.mxu1 %v2250_v21 }
 0x2f2   : > { %1654 = vmatpush3.bf16.msra.mxu1 %v2256_v23 }
 0x2f3   : > { %1655 = vmatprep.subr.bf16.mxu1 %v2262_v15 }
 0x2f6   : > { %1656 = vmatpush3.bf16.msra.mxu1 %v2268_v24 }
 0x2f7   : > { %1657 = vmatprep.subr.bf16.mxu1 %v2274_v25 }
 0x2fa   : > { %1658 = vmatpush3.bf16.msra.mxu1 %v2280_v26 }
 0x2fb   : > { %1659 = vmatprep.subr.bf16.mxu1 %v2286_v27 }
 0x2fe   : > { %1660 = vmatpush3.bf16.msra.mxu1 %v2292_v28 }
 0x2ff   : > { %1661 = vmatprep.subr.bf16.mxu1 %v2298_v29 }
 0x302   : > { %1662 = vmatpush3.bf16.msra.mxu1 %v2304_v30 }
 0x303   : > { %1663 = vmatprep.subr.bf16.mxu1 %v2310_v31 }
 0x306   : > { %1664 = vmatpush3.bf16.msra.mxu1 %v2316_v34 }
 0x307   : > { %1675 = vmatprep.subr.bf16.mxu1 %v2058_v0 }
 0x309   : > { %912 = vmatmul.mubr.bf16.vlgmr.msra.gmra.mrb[12].mxu1 %v2166_v19 }
 0x30a   : > { %1676 = vmatpush3.bf16.msra.mxu1 %v2064_v1 }
 0x30b   : > { %1677 = vmatprep.subr.bf16.mxu1 %v2070_v2 }
 0x30e   : > { %1678 = vmatpush3.bf16.msra.mxu1 %v2076_v3 }
 0x30f   : > { %1679 = vmatprep.subr.bf16.mxu1 %v2082_v4 }
 0x312   : > { %1680 = vmatpush3.bf16.msra.mxu1 %v2088_v5 }
 0x313   : > { %1681 = vmatprep.subr.bf16.mxu1 %v2094_v6 }
 0x316   : > { %1682 = vmatpush3.bf16.msra.mxu1 %v2100_v7 }
 0x317   : > { %1683 = vmatprep.subr.bf16.mxu1 %v2106_v8 }
 0x31a   : > { %1684 = vmatpush3.bf16.msra.mxu1 %v2117_v9 }
 0x31b   : > { %1685 = vmatprep.subr.bf16.mxu1 %v2123_v10 }
 0x31e   : > { %1686 = vmatpush3.bf16.msra.mxu1 %v2131_v12 }
 0x31f   : > { %1687 = vmatprep.subr.bf16.mxu1 %v2138_v14 }
 0x322   : > { %1688 = vmatpush3.bf16.msra.mxu1 %v2147_v16  ;;  %v2351_v16 = vld [vmem:[%s2111_s14 + $0x8] sm:$0xff]  ;;  %s1622_s14 = sshll.u32 %s2028_s21, 8  ;;  %s2468_s21 = scalar_lea.sflag [#allocation3], %s380_s22 }
 0x323   : > { %1689 = vmatprep.subr.bf16.mxu1 %v2153_v17  ;;  %v1095_v17 = vcombine.high %v2351_v16, %v2351_v16  ;;  %v2360_v19 = vpack.c.bf16 %v2351_v16, %v2351_v16  ;;  %s2463_s13 = scalar_lea.hbm %s2520_s11, %s1622_s14 }
 0x325   : > { %v2362_v35 = vpack.c.bf16 %v1095_v17, %v1095_v17 }
 0x326   : > { %1690 = vmatpush3.bf16.msra.mxu1 %v2160_v18  ;;  %v465_v18 = vld [vmem:[%s2517_s8] sm:$0xf] }
 0x327   : > { %1763 = vmatprep.subr.bf16.mxu1 %v1941_v20  ;;  %972 = vperm.xlu1 %1820, %v465_v18  }
 0x328   : > { %1131 = vmatprep.mubr.bf16.mxu1 %v2362_v35 }
 0x329   : > { %1132 = vmatmul.mubr.bf16.vlgmr.msra.gmra.mrb[16].mxu1 %v2360_v19 }
 0x32a   : > { %1765 = vmatprep.mubr.msk.bf16.mxu1 %vm1942_vm0, %v1941_v20 }
 0x3a6   : > { %v2391_v62 = vpop.permute.xlu1 %972 }
 0x3bc   : > { %v2338_v0 = vpop.f32.mrb[8].mxu1 }
 0x3bd   : > { %v2340_v1 = vpop.f32.mrb[9].mxu1 }
 0x3be   : > { %v1083_v2 = vcombine.low %v2338_v0, %v2340_v1  ;;  %v780_v3 = vpop.f32.mrb[10].mxu1 }
 0x3bf   : > { %v781_v4 = vpop.f32.mrb[11].mxu1 }
 0x3dc   : > { %v1665_v5 = vpop.f32.mrb[12].mxu1 }
 0x3dd   : > { %v1666_v6 = vpop.f32.mrb[13].mxu1 }
 0x3de   : > { %v1667_v7 = vadd.f32 %v1666_v6, %v1665_v5  ;;  %v1668_v8 = vpop.f32.mrb[14].mxu1 }
 0x3df   : > { %v1669_v9 = vpop.f32.mrb[15].mxu1 }
 0x3e0   : > { %v919_v10 = vmul.f32 0.0625, %v1667_v7 }
 0x3e2   : > { %v920_v12 = vpack.c.bf16 %v919_v10, %v919_v10 }
 0x3e4   : > { %v922_v14 = vsel %vm619_vm1, %v920_v12, 0 }
 0x3e5   : > { %1740 = vmatpush3.bf16.msra.mxu0 %v922_v14 }
 0x3e6   : > { %1745 = vmatprep.subr.bf16.mxu0 %v1941_v20 }
 0x3e8   : > { %1742 = vmatmul.mubr.msk.bf16.vlgmr.msra.gmra.mrb[4].mxu0 %vm615_vm2, %v2188_v32 }
 0x3e9   : > { %1747 = vmatprep.mubr.msk.bf16.mxu0 %vm1942_vm0, %v1941_v20 }
 0x3fc   : > { %v1691_v54 = vpop.f32.mrb[16].mxu1 }
 0x3fd   : > { %v1692_v55 = vpop.f32.mrb[17].mxu1 }
 0x3fe   : > { %v1694_v57 = vpop.f32.mrb[18].mxu1  ;;  %v1693_v60 = vadd.f32 %v1692_v55, %v1691_v54 }
 0x3ff   : > { %v1695_v59 = vpop.f32.mrb[19].mxu1 }
 0x400   : > { %v1139_v14 = vmul.f32 0.0625, %v1693_v60 }
 0x402   : > { %v1140_v17 = vpack.c.bf16 %v1139_v14, %v1139_v14 }
 0x4bb   : > { %v958_v36 = vpop.f32.mrb[4].mxu0 }
 0x4bc   : > { %v959_v37 = vadd.f32 %v958_v36, %v2195_v33  ;;  %v1743_v38 = vpop.f32.mrb[5].mxu0 }
 0x4bd   : > { %v961_v39 = vpop.f32.mrb[6].mxu0 }
 0x4be   : > { %v964_v40 = vadd.f32 3.0, %v959_v37  ;;  %v1744_v41 = vpop.f32.mrb[7].mxu0 }
 0x4c0   : > { %v965_v42 = vmax.f32 %v964_v40, 0.0  ;;  %v1085_v40 = vmul.f32 %v1083_v2, %v2126_v11 }
 0x4c2   : > { %v966_v43 = vmin.f32 %v965_v42, 6.0 }
 0x4c4   : > { %v967_v44 = vmul.f32 0.16666667, %v966_v43 }
 0x4c6   : > { %v968_v45 = vmul.f32 %v967_v44, %v959_v37  ;;  %v1142_v37 = vsel %vm619_vm1, %v1140_v17, 0 }
 0x4c8   : > { %v969_v51 = vpack.c.bf16 %v968_v45, %v968_v45 }
 0x4ca   : > { %v979_v52 = vsel %vm678_vm3, %v969_v51, 0 }
 0x4cb   : > { %1746 = vmatpush3.bf16.msra.mxu0 %v979_v52 }
 0x4cc   : > { %1040 = vmatprep.subr.bf16.mxu0 %v2381_v56 }
 0x4ce   : > { %1748 = vmatmul.mubr.msk.bf16.vlgmr.msra.gmra.mrb[8].mxu0 %vm674_vm4, %v2373_v53 }
 0x4cf   : > { %1072 = vmatprep.mubr.bf16.mxu0 %v1943_v22  ;;  %1041 = vmatpush1.bf16.msra.mxu0 %v2386_v58 }
 0x4d0   : > { %1751 = vmatprep.subr.bf16.mxu0 %v1941_v20 }
 0x5a1   : > { %v1015_v3 = vpop.f32.mrb[8].mxu0 }
 0x5a2   : > { %v1016_v4 = vadd.f32 %v1015_v3, %v2391_v62  ;;  %v1749_v5 = vpop.f32.mrb[9].mxu0 }
 0x5a3   : > { %v1018_v6 = vpop.f32.mrb[10].mxu0 }
 0x5a4   : > { %v1021_v7 = vsub.f32 0.0, %v1016_v4  ;;  %v1750_v8 = vpop.f32.mrb[11].mxu0 }
 0x5a6   : > { %v1022_v9 = vmul.f32 1.442695, %v1021_v7 }
 0x5a8   : > { %1865 = vpow2.f32 %v1022_v9 }
 0x5b2   : > { %v1866_v10 = vpop.eup %1865 }
 0x5b3   : > { %v1024_v12 = vadd.f32 1.0, %v1866_v10 }
 0x5b5   : > { %1867 = vrcp.f32 %v1024_v12 }
 0x5bf   : > { %v1868_v18 = vpop.eup %1867 }
 0x5c0   : > { %v1026_v36 = vpack.c.bf16 %v1868_v18, %v1868_v18 }
 0x5c2   : > { %1605 = vmatmul.mubr.msk.bf16.vlgmr.msra.gmra.mrb[12].mxu0 %vm738_vm5, %v1026_v36 }
 0x5c3   : > { %1752 = vmatpush3.bf16.msra.mxu0 %v1142_v37  ;;  %1753 = vmatprep.mubr.msk.bf16.mxu0 %vm1942_vm0, %v1941_v20 }
 0x5c4   : > { %1757 = vmatprep.subr.bf16.mxu0 %v1941_v20 }
 0x5ca   : > { %1754 = vmatmul.mubr.msk.bf16.vlgmr.msra.gmra.mrb[16].mxu0 %vm615_vm2, %v2188_v32 }
 0x5cb   : > { %1759 = vmatprep.mubr.msk.bf16.mxu0 %vm1942_vm0, %v1941_v20 }
 0x695   : > { %v1074_v38 = vpop.f32.mrb[12].mxu0 }
 0x696   : > { %v1076_v39 = vpop.f32.mrb[13].mxu0 }
 0x697   : > { %v1088_v41 = vcombine.low %v1074_v38, %v1076_v39  ;;  %v1078_v42 = vpop.f32.mrb[14].mxu0 }
 0x698   : > { %v1079_v43 = vpop.f32.mrb[15].mxu0 }
 0x699   : > { %v1090_v44 = vmul.f32 %v1088_v41, %v1085_v40 }
 0x69b   : > { %1091 = vst [vmem:[%s2410_s25] sm:$0xff] %v1090_v44 }
 0x69d   : > { %v1178_v45 = vpop.f32.mrb[16].mxu0 }
 0x69e   : > { %v1179_v51 = vadd.f32 %v1178_v45, %v2195_v33  ;;  %v1755_v52 = vpop.f32.mrb[17].mxu0 }
 0x69f   : > { %v1181_v54 = vpop.f32.mrb[18].mxu0 }
 0x6a0   : > { %v1184_v55 = vadd.f32 3.0, %v1179_v51  ;;  %v1756_v57 = vpop.f32.mrb[19].mxu0 }
 0x6a2   : > { %v1185_v59 = vmax.f32 %v1184_v55, 0.0 }
 0x6a4   : > { %v1186_v60 = vmin.f32 %v1185_v59, 6.0 }
 0x6a6   : > { %v1187_v3 = vmul.f32 0.16666667, %v1186_v60 }
 0x6a8   : > { %v1188_v0 = vmul.f32 %v1187_v3, %v1179_v51 }
 0x6aa   : > { %v1189_v11 = vpack.c.bf16 %v1188_v0, %v1188_v0 }
 0x6ac   : > { %v1191_v1 = vsel %vm678_vm3, %v1189_v11, 0 }
 0x6ad   : > { %1758 = vmatpush3.bf16.msra.mxu0 %v1191_v1 }
 0x6ae   : > { %1242 = vmatprep.subr.bf16.mxu0 %v2210_v47 }
 0x6b0   : > { %1760 = vmatmul.mubr.msk.bf16.vlgmr.msra.gmra.mrb[20].mxu0 %vm674_vm4, %v2202_v46 }
 0x6b1   : > { %1243 = vmatpush1.bf16.msra.mxu0 %v2215_v48  ;;  %1274 = vmatprep.mubr.bf16.mxu0 %v1943_v22 }
 0x6b2   : > { %1701 = vmatprep.subr.bf16.mxu0 %v2222_v49 }
 0x783   : > { %v1227_v2 = vpop.f32.mrb[20].mxu0 }
 0x784   : > { %v1228_v4 = vadd.f32 %v1227_v2, %v2225_v50  ;;  %v1761_v5 = vpop.f32.mrb[21].mxu0 }
 0x785   : > { %v1230_v6 = vpop.f32.mrb[22].mxu0 }
 0x786   : > { %v1233_v7 = vsub.f32 0.0, %v1228_v4  ;;  %v1762_v8 = vpop.f32.mrb[23].mxu0 }
 0x788   : > { %v1234_v9 = vmul.f32 1.442695, %v1233_v7 }
 0x78a   : > { %1869 = vpow2.f32 %v1234_v9 }
 0x794   : > { %v1870_v10 = vpop.eup %1869 }
 0x795   : > { %v1236_v47 = vadd.f32 1.0, %v1870_v10 }
 0x797   : > { %1871 = vrcp.f32 %v1236_v47 }
 0x7a1   : > { %v1872_v12 = vpop.eup %1871 }
 0x7a2   : > { %v1238_v46 = vpack.c.bf16 %v1872_v12, %v1872_v12 }
 0x7a4   : > { %1609 = vmatmul.mubr.msk.bf16.vlgmr.msra.gmra.mrb[24].mxu0 %vm738_vm5, %v1238_v46 }
 0x7a5   : > { %1702 = vmatpush3.bf16.msra.mxu0 %v2231_v61  ;;  %1315 = vmatprep.mubr.bf16.mxu0 %v2362_v35 }
 0x7a6   : > { %1703 = vmatprep.subr.bf16.mxu0 %v2236_v63 }
 0x7a9   : > { %1704 = vmatpush3.bf16.msra.mxu0 %v2243_v13 }
 0x7aa   : > { %1705 = vmatprep.subr.bf16.mxu0 %v2250_v21 }
 0x7ad   : > { %1706 = vmatpush3.bf16.msra.mxu0 %v2256_v23 }
 0x7ae   : > { %1707 = vmatprep.subr.bf16.mxu0 %v2262_v15 }
 0x7b1   : > { %1708 = vmatpush3.bf16.msra.mxu0 %v2268_v24 }
 0x7b2   : > { %1709 = vmatprep.subr.bf16.mxu0 %v2274_v25 }
 0x7b5   : > { %1710 = vmatpush3.bf16.msra.mxu0 %v2280_v26 }
 0x7b6   : > { %1711 = vmatprep.subr.bf16.mxu0 %v2286_v27 }
 0x7b9   : > { %1712 = vmatpush3.bf16.msra.mxu0 %v2292_v28 }
 0x7ba   : > { %1713 = vmatprep.subr.bf16.mxu0 %v2298_v29 }
 0x7bd   : > { %1714 = vmatpush3.bf16.msra.mxu0 %v2304_v30 }
 0x7be   : > { %1715 = vmatprep.subr.bf16.mxu0 %v2310_v31 }
 0x7c1   : > { %1716 = vmatpush3.bf16.msra.mxu0 %v2316_v34 }
 0x7c4   : > { %1316 = vmatmul.mubr.bf16.vlgmr.msra.gmra.mrb[28].mxu0 %v2360_v19 }
 0x877   : > { %v1276_v48 = vpop.f32.mrb[24].mxu0 }
 0x878   : > { %v1278_v49 = vpop.f32.mrb[25].mxu0 }
 0x879   : > { %v1469_v50 = vcombine.low %v1276_v48, %v1278_v49  ;;  %v1280_v61 = vpop.f32.mrb[26].mxu0 }
 0x87a   : > { %v1281_v63 = vpop.f32.mrb[27].mxu0 }
 0x87b   : > { %v1471_v43 = vmul.f32 %v2351_v16, %v1469_v50 }
 0x897   : > { %v1717_v13 = vpop.f32.mrb[28].mxu0 }
 0x898   : > { %v1718_v21 = vpop.f32.mrb[29].mxu0 }
 0x899   : > { %v1719_v23 = vadd.f32 %v1718_v21, %v1717_v13  ;;  %v1720_v15 = vpop.f32.mrb[30].mxu0 }
 0x89a   : > { %v1721_v24 = vpop.f32.mrb[31].mxu0 }
 0x89b   : > { %v1323_v25 = vmul.f32 0.0625, %v1719_v23 }
 0x89d   : > { %v1324_v26 = vpack.c.bf16 %v1323_v25, %v1323_v25 }
 0x89f   : > { %v1326_v27 = vsel %vm619_vm1, %v1324_v26, 0 }
 0x8a0   : > { %1764 = vmatpush3.bf16.msra.mxu1 %v1326_v27 }
 0x8a1   : > { %1769 = vmatprep.subr.bf16.mxu1 %v1941_v20 }
 0x8a3   : > { %1766 = vmatmul.mubr.msk.bf16.vlgmr.msra.gmra.mrb[20].mxu1 %vm615_vm2, %v2188_v32 }
 0x8a4   : > { %1771 = vmatprep.mubr.msk.bf16.mxu1 %vm1942_vm0, %v1941_v20 }
 0x976   : > { %v1362_v28 = vpop.f32.mrb[20].mxu1 }
 0x977   : > { %v1363_v29 = vadd.f32 %v1362_v28, %v2195_v33  ;;  %v1767_v30 = vpop.f32.mrb[21].mxu1 }
 0x978   : > { %v1365_v31 = vpop.f32.mrb[22].mxu1 }
 0x979   : > { %v1368_v34 = vadd.f32 3.0, %v1363_v29  ;;  %v1768_v19 = vpop.f32.mrb[23].mxu1 }
 0x97b   : > { %v1369_v35 = vmax.f32 %v1368_v34, 0.0 }
 0x97d   : > { %v1370_v14 = vmin.f32 %v1369_v35, 6.0 }
 0x97f   : > { %v1371_v17 = vmul.f32 0.16666667, %v1370_v14 }
 0x981   : > { %v1372_v18 = vmul.f32 %v1371_v17, %v1363_v29 }
 0x983   : > { %v1373_v36 = vpack.c.bf16 %v1372_v18, %v1372_v18 }
 0x985   : > { %v1375_v37 = vsel %vm678_vm3, %v1373_v36, 0 }
 0x986   : > { %1770 = vmatpush3.bf16.msra.mxu1 %v1375_v37 }
 0x987   : > { %1426 = vmatprep.subr.bf16.mxu1 %v2381_v56 }
 0x989   : > { %1772 = vmatmul.mubr.msk.bf16.vlgmr.msra.gmra.mrb[24].mxu1 %vm674_vm4, %v2373_v53 }
 0x98a   : > { %1427 = vmatpush1.bf16.msra.mxu1 %v2386_v58  ;;  %1458 = vmatprep.mubr.bf16.mxu1 %v1943_v22 }
 0xa5c   : > { %v1411_v20 = vpop.f32.mrb[24].mxu1 }
 0xa5d   : > { %v1412_v32 = vadd.f32 %v1411_v20, %v2391_v62  ;;  %v1773_v33 = vpop.f32.mrb[25].mxu1 }
 0xa5e   : > { %v1414_v38 = vpop.f32.mrb[26].mxu1 }
 0xa5f   : > { %v1417_v39 = vsub.f32 0.0, %v1412_v32  ;;  %v1774_v40 = vpop.f32.mrb[27].mxu1 }
 0xa61   : > { %v1418_v41 = vmul.f32 1.442695, %v1417_v39 }
 0xa63   : > { %1873 = vpow2.f32 %v1418_v41 }
 0xa6d   : > { %v1874_v42 = vpop.eup %1873 }
 0xa6e   : > { %v1420_v56 = vadd.f32 1.0, %v1874_v42 }
 0xa70   : > { %1875 = vrcp.f32 %v1420_v56 }
 0xa7a   : > { %v1876_v53 = vpop.eup %1875 }
 0xa7b   : > { %v1422_v58 = vpack.c.bf16 %v1876_v53, %v1876_v53 }
 0xa7d   : > { %1612 = vmatmul.mubr.msk.bf16.vlgmr.msra.gmra.mrb[28].mxu1 %vm738_vm5, %v1422_v58 }
 0xb50   : > { %v1460_v22 = vpop.f32.mrb[28].mxu1 }
 0xb51   : > { %v1462_v62 = vpop.f32.mrb[29].mxu1 }
 0xb52   : > { %v1474_v44 = vcombine.low %v1460_v22, %v1462_v62  ;;  %v1464_v45 = vpop.f32.mrb[30].mxu1 }
 0xb53   : > { %v1465_v51 = vpop.f32.mrb[31].mxu1 }
 0xb54   : > { %v1476_v52 = vmul.f32 %v1474_v44, %v1471_v43 }
 0xb56   : > { %1613 = vst [vmem:[%s2410_s25 + $0x8] sm:$0xff] %v1476_v52 }
 0xb57   : > { %1890 = shalt.err (!%p1887_p3)
}
 0xb58   : > { %s1891_s22 = scalar_lea.hbm %s2463_s13, 256  ;;  %s1895_s29 = scalar_lea.hbm %s2520_s11, 512 }
 0xb59   : > { %p1892_p4 = scmp.ne.s32.totalorder %s2463_s13, %s1891_s22  ;;  %p1896_p9 = scmp.lt.u32.totalorder %s2463_s13, %s2520_s11 }
 0xb5a   : > { %p1897_p10 = scmp.lt.u32.totalorder %s1895_s29, %s1891_s22  ;;  %p1899_p12 = scmp.lt.u32.totalorder %s1891_s22, %s2463_s13 }
 0xb5b   : > { %p1893_p7 = pnand %p1892_p4, %p2045_p5 }
 0xb5c   : > { %p1898_p11 = por %p1897_p10, %p1896_p9 }
 0xb5d   : > { %p1894_p8 = pneg %p1893_p7 }
 0xb5e   : > { %p1900_p13 = por %p1899_p12, %p1898_p11 }
 0xb60   : > { %p1901_p0 = pnand %p1900_p13, %p1894_p8 }
 0xb62   : > { %1904 = shalt.err (!%p1901_p0)
}
 0xb63   : > { %s1945_s0 = smov 128   ;;  %s1946_s12 = smov 8  }
 0xb64   : > { %1775 = dma.vmem_to_hbm [thread:$0]  (%p2045_p5), %s2458_s16, 256, %s2463_s13, %s2468_s21, %s1945_s0, %s1945_s0, %s1946_s12  }
 0xb65 PF: > { %p1781_p1 = scmp.ge.s32.totalorder %s1939_s20, 2  ;;  %s1509_s24 = sand.u32 1, %s1927_s17  }
 0xb66   : > { %s1510_s22 = scalar_lea.sflag [#allocation3], %s1509_s24 }
 0xb67   : > { %p1778_p2 = pnand %p1781_p1, %p2049_p6 }
 0xb69   : > { %1922 = dma.done.wait (!%p1778_p2), %s1510_s22, 256  }
 0xb6a   : > { %1924 = vsyncadd (!%p1778_p2), %s1510_s22, 4294967040  ;;  %p21_p3 = scmp.ge.s32.totalorder %s2032_s23, 4   ;;  %s2525_s17 = smov %s1931_s18 }
 0xb6b   : > { %s2526_s18 = smov %s1935_s19  ;;  %s2527_s19 = smov %s2043_s26 }
 0xb6c   : > { %s2528_s20 = smov %s2032_s23  ;;  %23 = sbr.rel (!%p21_p3) target bundleno = 5 (0x5), region = 101 }
 0xb73   :  { %1515 = vsyncpa [#allocation3], 1 }
 0xb74   :  { %1517 = vsyncpa [#allocation3 + $0x1], 1 }

</bundles_post_ra>
